<compile_context>
chip_gen: v5e
topology: v5e:2x2
jax: 0.10.0
libtpu: 0.0.40
codegen_flags: <defaults>
</compile_context>

<pallas_src>
import functools
import math

import jax
import jax.numpy as jnp
from jax.experimental import pallas as pl
from jax.experimental.pallas import tpu as pltpu

_EPS = 1e-5  # InstanceNorm3d default eps


# --------------------------------------------------------------------------- #
# Pass A: conv1 (3x3x3) + 1x1x1 shortcut conv + IN statistics for both.
# --------------------------------------------------------------------------- #
def _pass_a_kernel(xm_ref, x0_ref, xp2_ref, w1_ref, wsc_ref, msk_ref,
                   y1_ref, sc_ref, st1_ref, stsc_ref, *, hp, wp):
    d = pl.program_id(1)

    @pl.when(d == 0)
    def _init():
        st1_ref[...] = jnp.zeros_like(st1_ref)
        stsc_ref[...] = jnp.zeros_like(stsc_ref)

    n_sp = hp * wp
    # depth-concatenated, margin-extended input planes: (3*Cin, L) bf16
    x3 = jnp.concatenate([xm_ref[0, 0], x0_ref[0, 0], xp2_ref[0, 0]], axis=0)

    # 3x3x3 conv = 9 shifted lane-slices, one MXU matmul each, f32 accumulate.
    y = None
    for kh in range(3):
        for kw in range(3):
            t = kh * wp + kw
            xs = x3[:, t:t + n_sp]                              # (3*Cin, Hp*Wp)
            part = jnp.dot(w1_ref[kh * 3 + kw], xs,
                           preferred_element_type=jnp.float32)
            y = part if y is None else y + part                 # (Cm, Hp*Wp) f32

    # 1x1x1 shortcut conv on the centered (genuinely zero-padded) x plane.
    xc = x0_ref[0, 0][:, wp + 1:wp + 1 + n_sp]                  # (Cin, Hp*Wp)
    sc = jnp.dot(wsc_ref[...], xc, preferred_element_type=jnp.float32)

    # InstanceNorm statistics (masked to the H*W valid interior), f32.
    msk = msk_ref[...]                                          # (1, Hp*Wp)
    ym = y * msk
    st1_ref[0] += jnp.concatenate(
        [jnp.sum(ym, axis=1, keepdims=True),
         jnp.sum(ym * y, axis=1, keepdims=True)], axis=1)
    stsc_ref[0] += jnp.concatenate(
        [jnp.sum(sc, axis=1, keepdims=True),
         jnp.sum(sc * sc, axis=1, keepdims=True)], axis=1)

    y1_ref[0, 0] = y.astype(jnp.bfloat16)
    sc_ref[0, 0] = sc.astype(jnp.bfloat16)


# --------------------------------------------------------------------------- #
# Pass B: fused IN1 + ReLU on the fly, then conv2 (3x3x3) + its IN statistics.
# --------------------------------------------------------------------------- #
def _pass_b_kernel(ym_ref, y0_ref, yp_ref, st1_ref, w2_ref, msk_ref,
                   y2_ref, st2_ref, *, hp, wp, depth, s_count):
    d = pl.program_id(1)

    @pl.when(d == 0)
    def _init():
        st2_ref[...] = jnp.zeros_like(st2_ref)

    n_sp = hp * wp
    inv_s = jnp.float32(1.0 / s_count)
    st1 = st1_ref[0]                                            # (Cm, 2) f32
    mean1 = st1[:, 0:1] * inv_s
    var1 = st1[:, 1:2] * inv_s - mean1 * mean1
    rstd1 = jax.lax.rsqrt(var1 + _EPS)

    msk = msk_ref[...]                                          # (1, Hp*Wp) f32
    gate_m = msk * (d > 0).astype(jnp.float32)                  # depth-halo validity
    gate_p = msk * (d < depth - 1).astype(jnp.float32)
    gates = (gate_m, msk, gate_p)

    planes = (ym_ref[0, 0], y0_ref[0, 0], yp_ref[0, 0])
    normed = []
    for kd in range(3):
        v = (planes[kd].astype(jnp.float32) - mean1) * rstd1    # fused InstanceNorm1
        v = jnp.maximum(v, 0.0) * gates[kd]                     # ReLU + zero padding
        normed.append(v.astype(jnp.bfloat16))
    x3 = jnp.concatenate(normed, axis=0)                        # (3*Cm, Hp*Wp)
    zmarg = jnp.zeros((x3.shape[0], wp + 1), jnp.bfloat16)
    x3 = jnp.concatenate([zmarg, x3, zmarg], axis=1)            # (3*Cm, L)

    y = None
    for kh in range(3):
        for kw in range(3):
            t = kh * wp + kw
            xs = x3[:, t:t + n_sp]
            part = jnp.dot(w2_ref[kh * 3 + kw], xs,
                           preferred_element_type=jnp.float32)
            y = part if y is None else y + part                 # (Cout, Hp*Wp) f32

    ym2 = y * msk
    st2_ref[0] += jnp.concatenate(
        [jnp.sum(ym2, axis=1, keepdims=True),
         jnp.sum(ym2 * y, axis=1, keepdims=True)], axis=1)

    y2_ref[0, 0] = y.astype(jnp.bfloat16)


# --------------------------------------------------------------------------- #
# Pass C: IN2 + IN_shortcut + residual add + ReLU (single elementwise pass).
# --------------------------------------------------------------------------- #
def _pass_c_kernel(y2_ref, sc_ref, st2_ref, stsc_ref, o_ref, *, s_count):
    inv_s = jnp.float32(1.0 / s_count)

    st2 = st2_ref[0]
    m2 = st2[:, 0:1] * inv_s
    r2 = jax.lax.rsqrt(st2[:, 1:2] * inv_s - m2 * m2 + _EPS)

    sts = stsc_ref[0]
    ms = sts[:, 0:1] * inv_s
    rs = jax.lax.rsqrt(sts[:, 1:2] * inv_s - ms * ms + _EPS)

    y2 = (y2_ref[0, 0].astype(jnp.float32) - m2) * r2
    sc = (sc_ref[0, 0].astype(jnp.float32) - ms) * rs
    o_ref[0, 0] = jnp.maximum(y2 + sc, 0.0)


# --------------------------------------------------------------------------- #
# Forward
# --------------------------------------------------------------------------- #
def res_two_layer_conv_block1(x_ncdhw, params):
    """x: (N, Cin, D, H, W) f32 -> (N, Cout, D, H, W) f32 (stride=1)."""
    N, Cin, D, H, W = x_ncdhw.shape
    Hp, Wp = H + 2, W + 2
    Dp = D + 2
    n_sp = Hp * Wp
    L = n_sp + 2 * (Wp + 1)
    S = D * H * W

    w1 = params["conv1"]        # (Cm, Cin, 3, 3, 3)
    w2 = params["conv2"]        # (Cout, Cm, 3, 3, 3)
    wsc = params["shortcut"]    # (Cout, Cin, 1, 1, 1)
    Cm, Cout = w1.shape[0], w2.shape[0]

    # ---- host-side glue (cheap, no data blowup) --------------------------- #
    xt = jnp.transpose(x_ncdhw, (0, 2, 1, 3, 4))                # (N, D, Cin, H, W)
    xp = jnp.pad(xt, ((0, 0), (1, 1), (0, 0), (1, 1), (1, 1)))  # pad D, H, W
    xp = xp.reshape(N, Dp, Cin, n_sp)
    xp = jnp.pad(xp, ((0, 0), (0, 0), (0, 0), (Wp + 1, Wp + 1)))
    xp = xp.astype(jnp.bfloat16)                                # (N, Dp, Cin, L)

    # weight slabs: [kh*3+kw, Cout, kd*Cin+ci], bf16
    w1_9 = jnp.transpose(w1, (3, 4, 0, 2, 1)).reshape(9, Cm, 3 * Cin)
    w1_9 = w1_9.astype(jnp.bfloat16)
    w2_9 = jnp.transpose(w2, (3, 4, 0, 2, 1)).reshape(9, Cout, 3 * Cm)
    w2_9 = w2_9.astype(jnp.bfloat16)
    wsc_m = wsc[:, :, 0, 0, 0].astype(jnp.bfloat16)             # (Cout, Cin)

    # interior-validity mask over a flattened padded plane (f32)
    col = jnp.arange(n_sp, dtype=jnp.int32)
    hh, ww = col // Wp, col % Wp
    msk = ((hh >= 1) & (hh <= H) & (ww >= 1) & (ww <= W))
    msk = msk.astype(jnp.float32).reshape(1, n_sp)

    cp_acc = pltpu.CompilerParams(
        dimension_semantics=("parallel", "arbitrary"),
        vmem_limit_bytes=48 * 1024 * 1024)
    cp_par = pltpu.CompilerParams(
        dimension_semantics=("parallel", "parallel"),
        vmem_limit_bytes=48 * 1024 * 1024)

    # ---- pass A: conv1 + shortcut conv + stats ---------------------------- #
    y1, sc, st1, stsc = pl.pallas_call(
        functools.partial(_pass_a_kernel, hp=Hp, wp=Wp),
        grid=(N, D),
        in_specs=[
            pl.BlockSpec((1, 1, Cin, L), lambda n, d: (n, d, 0, 0)),
            pl.BlockSpec((1, 1, Cin, L), lambda n, d: (n, d + 1, 0, 0)),
            pl.BlockSpec((1, 1, Cin, L), lambda n, d: (n, d + 2, 0, 0)),
            pl.BlockSpec((9, Cm, 3 * Cin), lambda n, d: (0, 0, 0)),
            pl.BlockSpec((Cout, Cin), lambda n, d: (0, 0)),
            pl.BlockSpec((1, n_sp), lambda n, d: (0, 0)),
        ],
        out_specs=[
            pl.BlockSpec((1, 1, Cm, n_sp), lambda n, d: (n, d, 0, 0)),
            pl.BlockSpec((1, 1, Cout, n_sp), lambda n, d: (n, d, 0, 0)),
            pl.BlockSpec((1, Cm, 2), lambda n, d: (n, 0, 0)),
            pl.BlockSpec((1, Cout, 2), lambda n, d: (n, 0, 0)),
        ],
        out_shape=[
            jax.ShapeDtypeStruct((N, D, Cm, n_sp), jnp.bfloat16),
            jax.ShapeDtypeStruct((N, D, Cout, n_sp), jnp.bfloat16),
            jax.ShapeDtypeStruct((N, Cm, 2), jnp.float32),
            jax.ShapeDtypeStruct((N, Cout, 2), jnp.float32),
        ],
        compiler_params=cp_acc,
    )(xp, xp, xp, w1_9, wsc_m, msk)

    # ---- pass B: fused IN1+ReLU, conv2 + stats ---------------------------- #
    y2, st2 = pl.pallas_call(
        functools.partial(_pass_b_kernel, hp=Hp, wp=Wp, depth=D, s_count=S),
        grid=(N, D),
        in_specs=[
            pl.BlockSpec((1, 1, Cm, n_sp),
                         lambda n, d: (n, jnp.maximum(d - 1, 0), 0, 0)),
            pl.BlockSpec((1, 1, Cm, n_sp), lambda n, d: (n, d, 0, 0)),
            pl.BlockSpec((1, 1, Cm, n_sp),
                         lambda n, d: (n, jnp.minimum(d + 1, D - 1), 0, 0)),
            pl.BlockSpec((1, Cm, 2), lambda n, d: (n, 0, 0)),
            pl.BlockSpec((9, Cout, 3 * Cm), lambda n, d: (0, 0, 0)),
            pl.BlockSpec((1, n_sp), lambda n, d: (0, 0)),
        ],
        out_specs=[
            pl.BlockSpec((1, 1, Cout, n_sp), lambda n, d: (n, d, 0, 0)),
            pl.BlockSpec((1, Cout, 2), lambda n, d: (n, 0, 0)),
        ],
        out_shape=[
            jax.ShapeDtypeStruct((N, D, Cout, n_sp), jnp.bfloat16),
            jax.ShapeDtypeStruct((N, Cout, 2), jnp.float32),
        ],
        compiler_params=cp_acc,
    )(y1, y1, y1, st1, w2_9, msk)

    # ---- pass C: IN2 + IN_sc + add + ReLU --------------------------------- #
    out = pl.pallas_call(
        functools.partial(_pass_c_kernel, s_count=S),
        grid=(N, D),
        in_specs=[
            pl.BlockSpec((1, 1, Cout, n_sp), lambda n, d: (n, d, 0, 0)),
            pl.BlockSpec((1, 1, Cout, n_sp), lambda n, d: (n, d, 0, 0)),
            pl.BlockSpec((1, Cout, 2), lambda n, d: (n, 0, 0)),
            pl.BlockSpec((1, Cout, 2), lambda n, d: (n, 0, 0)),
        ],
        out_specs=pl.BlockSpec((1, 1, Cout, n_sp), lambda n, d: (n, d, 0, 0)),
        out_shape=jax.ShapeDtypeStruct((N, D, Cout, n_sp), jnp.float32),
        compiler_params=cp_par,
    )(y2, sc, st2, stsc)

    out = out.reshape(N, D, Cout, Hp, Wp)[:, :, :, 1:H + 1, 1:W + 1]
    return jnp.transpose(out, (0, 2, 1, 3, 4))                   # (N, Cout, D, H, W)


# --------------------------------------------------------------------------- #
def init_params(key, in_channel, inter_channel, out_channel):
    k1, k2, k3 = jax.random.split(key, 3)

    def conv(k, cout, cin, ksz):
        fan_in = cin * ksz ** 3
        return (jax.random.normal(k, (cout, cin, ksz, ksz, ksz), jnp.float32)
                / math.sqrt(fan_in))

    return {
        "conv1": conv(k1, inter_channel, in_channel, 3),
        "conv2": conv(k2, out_channel, inter_channel, 3),
        "shortcut": conv(k3, out_channel, in_channel, 1),
    }


if __name__ == "__main__":
    key = jax.random.PRNGKey(0)
    kx, kp = jax.random.split(key)

    N, Cin, Cm, Cout, D = 2, 4, 8, 8, 16   # D = H = W = 16
    x = jax.random.normal(kx, (N, Cin, D, D, D), jnp.float32)
    params = init_params(kp, Cin, Cm, Cout)

    fwd = jax.jit(functools.partial(res_two_layer_conv_block1, params=params))
    out = fwd(x)
    jax.block_until_ready(out)
    assert out.shape == (N, Cout, D, D, D), out.shape
    assert bool(jnp.all(jnp.isfinite(out)))
    print("KERNEL_OK")
</pallas_src>

<mosaic_0001>
module attributes {stable_mosaic.version = 11 : i64} {
  func.func @_pass_a_kernel(%arg0: i32, %arg1: i32, %arg2: memref<1x1x4x362xbf16, #tpu.memory_space<vmem>>, %arg3: memref<1x1x4x362xbf16, #tpu.memory_space<vmem>>, %arg4: memref<1x1x4x362xbf16, #tpu.memory_space<vmem>>, %arg5: memref<9x8x12xbf16, #tpu.memory_space<vmem>>, %arg6: memref<8x4xbf16, #tpu.memory_space<vmem>>, %arg7: memref<1x324xf32, #tpu.memory_space<vmem>>, %arg8: memref<1x1x8x324xbf16, #tpu.memory_space<vmem>>, %arg9: memref<1x1x8x324xbf16, #tpu.memory_space<vmem>>, %arg10: memref<1x8x2xf32, #tpu.memory_space<vmem>>, %arg11: memref<1x8x2xf32, #tpu.memory_space<vmem>>) attributes {dimension_semantics = [#tpu.dimension_semantics<parallel>, #tpu.dimension_semantics<arbitrary>], iteration_bounds = array<i64: 2, 16>, scalar_prefetch = 0 : i64, scratch_operands = 0 : i64, tpu.core_type = #tpu.core_type<tc>, window_params = [{transform_indices = @transform_0, window_bounds = array<i64: 1, 1, 4, 362>}, {transform_indices = @transform_1, window_bounds = array<i64: 1, 1, 4, 362>}, {transform_indices = @transform_2, window_bounds = array<i64: 1, 1, 4, 362>}, {pipeline_mode = #tpu.pipeline_mode<synchronous>, transform_indices = @transform_3, window_bounds = array<i64: 9, 8, 12>}, {pipeline_mode = #tpu.pipeline_mode<synchronous>, transform_indices = @transform_4, window_bounds = array<i64: 8, 4>}, {pipeline_mode = #tpu.pipeline_mode<synchronous>, transform_indices = @transform_5, window_bounds = array<i64: 1, 324>}, {transform_indices = @transform_6, window_bounds = array<i64: 1, 1, 8, 324>}, {transform_indices = @transform_7, window_bounds = array<i64: 1, 1, 8, 324>}, {transform_indices = @transform_8, window_bounds = array<i64: 1, 8, 2>}, {transform_indices = @transform_9, window_bounds = array<i64: 1, 8, 2>}]} {
    %c0_i32 = arith.constant 0 : i32
    %0 = arith.cmpi eq, %arg1, %c0_i32 : i32
    %1 = arith.extui %0 : i1 to i32
    %c0_i32_0 = arith.constant 0 : i32
    %2 = arith.cmpi ne, %1, %c0_i32_0 : i32
    scf.if %2 {
      %cst_72 = arith.constant 0.000000e+00 : f32
      %94 = vector.broadcast %cst_72 : f32 to vector<1x8x2xf32>
      %c0_73 = arith.constant 0 : index
      %c0_74 = arith.constant 0 : index
      %c0_75 = arith.constant 0 : index
      %95 = vector.load %arg10[%c0_73, %c0_74, %c0_75] : memref<1x8x2xf32, #tpu.memory_space<vmem>>, vector<1x8x2xf32>
      tpu.vector_store %arg10[%c0_73, %c0_74, %c0_75], %94 {strides = array<i32>} : memref<1x8x2xf32, #tpu.memory_space<vmem>>, vector<1x8x2xf32>,
      %cst_76 = arith.constant 0.000000e+00 : f32
      %96 = vector.broadcast %cst_76 : f32 to vector<1x8x2xf32>
      %c0_77 = arith.constant 0 : index
      %c0_78 = arith.constant 0 : index
      %c0_79 = arith.constant 0 : index
      %97 = vector.load %arg11[%c0_77, %c0_78, %c0_79] : memref<1x8x2xf32, #tpu.memory_space<vmem>>, vector<1x8x2xf32>
      tpu.vector_store %arg11[%c0_77, %c0_78, %c0_79], %96 {strides = array<i32>} : memref<1x8x2xf32, #tpu.memory_space<vmem>>, vector<1x8x2xf32>,
    } else {
    }
    %c0 = arith.constant 0 : index
    %c0_1 = arith.constant 0 : index
    %c0_2 = arith.constant 0 : index
    %c0_3 = arith.constant 0 : index
    %3 = vector.load %arg2[%c0, %c0_1, %c0_2, %c0_3] : memref<1x1x4x362xbf16, #tpu.memory_space<vmem>>, vector<1x1x4x362xbf16>
    %4 = vector.shape_cast %3 : vector<1x1x4x362xbf16> to vector<4x362xbf16>
    %c0_4 = arith.constant 0 : index
    %c0_5 = arith.constant 0 : index
    %c0_6 = arith.constant 0 : index
    %c0_7 = arith.constant 0 : index
    %5 = vector.load %arg3[%c0_4, %c0_5, %c0_6, %c0_7] : memref<1x1x4x362xbf16, #tpu.memory_space<vmem>>, vector<1x1x4x362xbf16>
    %6 = vector.shape_cast %5 : vector<1x1x4x362xbf16> to vector<4x362xbf16>
    %c0_8 = arith.constant 0 : index
    %c0_9 = arith.constant 0 : index
    %c0_10 = arith.constant 0 : index
    %c0_11 = arith.constant 0 : index
    %7 = vector.load %arg4[%c0_8, %c0_9, %c0_10, %c0_11] : memref<1x1x4x362xbf16, #tpu.memory_space<vmem>>, vector<1x1x4x362xbf16>
    %8 = vector.shape_cast %7 : vector<1x1x4x362xbf16> to vector<4x362xbf16>
    %9 = tpu.concatenate %4, %6, %8 in 0 : vector<4x362xbf16>, vector<4x362xbf16>, vector<4x362xbf16> -> vector<12x362xbf16>
    %10 = vector.extract_strided_slice %9 {offsets = [0, 0], sizes = [12, 324], strides = [1, 1]} : vector<12x362xbf16> to vector<12x324xbf16>
    %c0_12 = arith.constant 0 : index
    %c0_13 = arith.constant 0 : index
    %c0_14 = arith.constant 0 : index
    %11 = vector.load %arg5[%c0_12, %c0_13, %c0_14] : memref<9x8x12xbf16, #tpu.memory_space<vmem>>, vector<1x8x12xbf16>
    %12 = vector.shape_cast %11 : vector<1x8x12xbf16> to vector<8x12xbf16>
    %cst = arith.constant dense<0.000000e+00> : vector<8x324xf32>
    %13 = tpu.matmul %12, %10, %cst {dimension_numbers = #tpu.dot_dimension_numbers<[1], [0], [0], [1], [0, 0, 1, 1], [], []>} : vector<8x12xbf16>, vector<12x324xbf16>, vector<8x324xf32> -> vector<8x324xf32>
    %14 = vector.extract_strided_slice %9 {offsets = [0, 1], sizes = [12, 324], strides = [1, 1]} : vector<12x362xbf16> to vector<12x324xbf16>
    %c1 = arith.constant 1 : index
    %c0_15 = arith.constant 0 : index
    %c0_16 = arith.constant 0 : index
    %15 = vector.load %arg5[%c1, %c0_15, %c0_16] : memref<9x8x12xbf16, #tpu.memory_space<vmem>>, vector<1x8x12xbf16>
    %16 = vector.shape_cast %15 : vector<1x8x12xbf16> to vector<8x12xbf16>
    %cst_17 = arith.constant dense<0.000000e+00> : vector<8x324xf32>
    %17 = tpu.matmul %16, %14, %cst_17 {dimension_numbers = #tpu.dot_dimension_numbers<[1], [0], [0], [1], [0, 0, 1, 1], [], []>} : vector<8x12xbf16>, vector<12x324xbf16>, vector<8x324xf32> -> vector<8x324xf32>
    %18 = arith.addf %13, %17 : vector<8x324xf32>
    %19 = vector.extract_strided_slice %9 {offsets = [0, 2], sizes = [12, 324], strides = [1, 1]} : vector<12x362xbf16> to vector<12x324xbf16>
    %c2 = arith.constant 2 : index
    %c0_18 = arith.constant 0 : index
    %c0_19 = arith.constant 0 : index
    %20 = vector.load %arg5[%c2, %c0_18, %c0_19] : memref<9x8x12xbf16, #tpu.memory_space<vmem>>, vector<1x8x12xbf16>
    %21 = vector.shape_cast %20 : vector<1x8x12xbf16> to vector<8x12xbf16>
    %cst_20 = arith.constant dense<0.000000e+00> : vector<8x324xf32>
    %22 = tpu.matmul %21, %19, %cst_20 {dimension_numbers = #tpu.dot_dimension_numbers<[1], [0], [0], [1], [0, 0, 1, 1], [], []>} : vector<8x12xbf16>, vector<12x324xbf16>, vector<8x324xf32> -> vector<8x324xf32>
    %23 = arith.addf %18, %22 : vector<8x324xf32>
    %24 = vector.extract_strided_slice %9 {offsets = [0, 18], sizes = [12, 324], strides = [1, 1]} : vector<12x362xbf16> to vector<12x324xbf16>
    %c3 = arith.constant 3 : index
    %c0_21 = arith.constant 0 : index
    %c0_22 = arith.constant 0 : index
    %25 = vector.load %arg5[%c3, %c0_21, %c0_22] : memref<9x8x12xbf16, #tpu.memory_space<vmem>>, vector<1x8x12xbf16>
    %26 = vector.shape_cast %25 : vector<1x8x12xbf16> to vector<8x12xbf16>
    %cst_23 = arith.constant dense<0.000000e+00> : vector<8x324xf32>
    %27 = tpu.matmul %26, %24, %cst_23 {dimension_numbers = #tpu.dot_dimension_numbers<[1], [0], [0], [1], [0, 0, 1, 1], [], []>} : vector<8x12xbf16>, vector<12x324xbf16>, vector<8x324xf32> -> vector<8x324xf32>
    %28 = arith.addf %23, %27 : vector<8x324xf32>
    %29 = vector.extract_strided_slice %9 {offsets = [0, 19], sizes = [12, 324], strides = [1, 1]} : vector<12x362xbf16> to vector<12x324xbf16>
    %c4 = arith.constant 4 : index
    %c0_24 = arith.constant 0 : index
    %c0_25 = arith.constant 0 : index
    %30 = vector.load %arg5[%c4, %c0_24, %c0_25] : memref<9x8x12xbf16, #tpu.memory_space<vmem>>, vector<1x8x12xbf16>
    %31 = vector.shape_cast %30 : vector<1x8x12xbf16> to vector<8x12xbf16>
    %cst_26 = arith.constant dense<0.000000e+00> : vector<8x324xf32>
    %32 = tpu.matmul %31, %29, %cst_26 {dimension_numbers = #tpu.dot_dimension_numbers<[1], [0], [0], [1], [0, 0, 1, 1], [], []>} : vector<8x12xbf16>, vector<12x324xbf16>, vector<8x324xf32> -> vector<8x324xf32>
    %33 = arith.addf %28, %32 : vector<8x324xf32>
    %34 = vector.extract_strided_slice %9 {offsets = [0, 20], sizes = [12, 324], strides = [1, 1]} : vector<12x362xbf16> to vector<12x324xbf16>
    %c5 = arith.constant 5 : index
    %c0_27 = arith.constant 0 : index
    %c0_28 = arith.constant 0 : index
    %35 = vector.load %arg5[%c5, %c0_27, %c0_28] : memref<9x8x12xbf16, #tpu.memory_space<vmem>>, vector<1x8x12xbf16>
    %36 = vector.shape_cast %35 : vector<1x8x12xbf16> to vector<8x12xbf16>
    %cst_29 = arith.constant dense<0.000000e+00> : vector<8x324xf32>
    %37 = tpu.matmul %36, %34, %cst_29 {dimension_numbers = #tpu.dot_dimension_numbers<[1], [0], [0], [1], [0, 0, 1, 1], [], []>} : vector<8x12xbf16>, vector<12x324xbf16>, vector<8x324xf32> -> vector<8x324xf32>
    %38 = arith.addf %33, %37 : vector<8x324xf32>
    %39 = vector.extract_strided_slice %9 {offsets = [0, 36], sizes = [12, 324], strides = [1, 1]} : vector<12x362xbf16> to vector<12x324xbf16>
    %c6 = arith.constant 6 : index
    %c0_30 = arith.constant 0 : index
    %c0_31 = arith.constant 0 : index
    %40 = vector.load %arg5[%c6, %c0_30, %c0_31] : memref<9x8x12xbf16, #tpu.memory_space<vmem>>, vector<1x8x12xbf16>
    %41 = vector.shape_cast %40 : vector<1x8x12xbf16> to vector<8x12xbf16>
    %cst_32 = arith.constant dense<0.000000e+00> : vector<8x324xf32>
    %42 = tpu.matmul %41, %39, %cst_32 {dimension_numbers = #tpu.dot_dimension_numbers<[1], [0], [0], [1], [0, 0, 1, 1], [], []>} : vector<8x12xbf16>, vector<12x324xbf16>, vector<8x324xf32> -> vector<8x324xf32>
    %43 = arith.addf %38, %42 : vector<8x324xf32>
    %44 = vector.extract_strided_slice %9 {offsets = [0, 37], sizes = [12, 324], strides = [1, 1]} : vector<12x362xbf16> to vector<12x324xbf16>
    %c7 = arith.constant 7 : index
    %c0_33 = arith.constant 0 : index
    %c0_34 = arith.constant 0 : index
    %45 = vector.load %arg5[%c7, %c0_33, %c0_34] : memref<9x8x12xbf16, #tpu.memory_space<vmem>>, vector<1x8x12xbf16>
    %46 = vector.shape_cast %45 : vector<1x8x12xbf16> to vector<8x12xbf16>
    %cst_35 = arith.constant dense<0.000000e+00> : vector<8x324xf32>
    %47 = tpu.matmul %46, %44, %cst_35 {dimension_numbers = #tpu.dot_dimension_numbers<[1], [0], [0], [1], [0, 0, 1, 1], [], []>} : vector<8x12xbf16>, vector<12x324xbf16>, vector<8x324xf32> -> vector<8x324xf32>
    %48 = arith.addf %43, %47 : vector<8x324xf32>
    %49 = vector.extract_strided_slice %9 {offsets = [0, 38], sizes = [12, 324], strides = [1, 1]} : vector<12x362xbf16> to vector<12x324xbf16>
    %c8 = arith.constant 8 : index
    %c0_36 = arith.constant 0 : index
    %c0_37 = arith.constant 0 : index
    %50 = vector.load %arg5[%c8, %c0_36, %c0_37] : memref<9x8x12xbf16, #tpu.memory_space<vmem>>, vector<1x8x12xbf16>
    %51 = vector.shape_cast %50 : vector<1x8x12xbf16> to vector<8x12xbf16>
    %cst_38 = arith.constant dense<0.000000e+00> : vector<8x324xf32>
    %52 = tpu.matmul %51, %49, %cst_38 {dimension_numbers = #tpu.dot_dimension_numbers<[1], [0], [0], [1], [0, 0, 1, 1], [], []>} : vector<8x12xbf16>, vector<12x324xbf16>, vector<8x324xf32> -> vector<8x324xf32>
    %53 = arith.addf %48, %52 : vector<8x324xf32>
    %c0_39 = arith.constant 0 : index
    %c0_40 = arith.constant 0 : index
    %c0_41 = arith.constant 0 : index
    %c0_42 = arith.constant 0 : index
    %54 = vector.load %arg3[%c0_39, %c0_40, %c0_41, %c0_42] : memref<1x1x4x362xbf16, #tpu.memory_space<vmem>>, vector<1x1x4x362xbf16>
    %55 = vector.shape_cast %54 : vector<1x1x4x362xbf16> to vector<4x362xbf16>
    %56 = vector.extract_strided_slice %55 {offsets = [0, 19], sizes = [4, 324], strides = [1, 1]} : vector<4x362xbf16> to vector<4x324xbf16>
    %c0_43 = arith.constant 0 : index
    %c0_44 = arith.constant 0 : index
    %57 = vector.load %arg6[%c0_43, %c0_44] : memref<8x4xbf16, #tpu.memory_space<vmem>>, vector<8x4xbf16>
    %cst_45 = arith.constant dense<0.000000e+00> : vector<8x324xf32>
    %58 = tpu.matmul %57, %56, %cst_45 {dimension_numbers = #tpu.dot_dimension_numbers<[1], [0], [0], [1], [0, 0, 1, 1], [], []>} : vector<8x4xbf16>, vector<4x324xbf16>, vector<8x324xf32> -> vector<8x324xf32>
    %c0_46 = arith.constant 0 : index
    %c0_47 = arith.constant 0 : index
    %59 = vector.load %arg7[%c0_46, %c0_47] : memref<1x324xf32, #tpu.memory_space<vmem>>, vector<1x324xf32>
    %60 = vector.broadcast %59 : vector<1x324xf32> to vector<8x324xf32>
    %61 = arith.mulf %53, %60 : vector<8x324xf32>
    %c0_48 = arith.constant 0 : index
    %c0_49 = arith.constant 0 : index
    %c0_50 = arith.constant 0 : index
    %62 = vector.load %arg10[%c0_48, %c0_49, %c0_50] : memref<1x8x2xf32, #tpu.memory_space<vmem>>, vector<1x8x2xf32>
    %63 = vector.shape_cast %62 : vector<1x8x2xf32> to vector<8x2xf32>
    %cst_51 = arith.constant dense<0.000000e+00> : vector<8xf32>
    %64 = vector.multi_reduction <add>, %61, %cst_51 [1] : vector<8x324xf32> to vector<8xf32>
    %65 = vector.shape_cast %64 : vector<8xf32> to vector<8x1xf32>
    %66 = arith.mulf %61, %53 : vector<8x324xf32>
    %cst_52 = arith.constant dense<0.000000e+00> : vector<8xf32>
    %67 = vector.multi_reduction <add>, %66, %cst_52 [1] : vector<8x324xf32> to vector<8xf32>
    %68 = vector.shape_cast %67 : vector<8xf32> to vector<8x1xf32>
    %69 = tpu.concatenate %65, %68 in 1 : vector<8x1xf32>, vector<8x1xf32> -> vector<8x2xf32>
    %70 = arith.addf %63, %69 : vector<8x2xf32>
    %c0_53 = arith.constant 0 : index
    %c0_54 = arith.constant 0 : index
    %c0_55 = arith.constant 0 : index
    %71 = vector.load %arg10[%c0_53, %c0_54, %c0_55] : memref<1x8x2xf32, #tpu.memory_space<vmem>>, vector<1x8x2xf32>
    %72 = vector.shape_cast %71 : vector<1x8x2xf32> to vector<8x2xf32>
    %73 = vector.shape_cast %70 : vector<8x2xf32> to vector<1x8x2xf32>
    tpu.vector_store %arg10[%c0_53, %c0_54, %c0_55], %73 {strides = array<i32>} : memref<1x8x2xf32, #tpu.memory_space<vmem>>, vector<1x8x2xf32>,
    %c0_56 = arith.constant 0 : index
    %c0_57 = arith.constant 0 : index
    %c0_58 = arith.constant 0 : index
    %74 = vector.load %arg11[%c0_56, %c0_57, %c0_58] : memref<1x8x2xf32, #tpu.memory_space<vmem>>, vector<1x8x2xf32>
    %75 = vector.shape_cast %74 : vector<1x8x2xf32> to vector<8x2xf32>
    %cst_59 = arith.constant dense<0.000000e+00> : vector<8xf32>
    %76 = vector.multi_reduction <add>, %58, %cst_59 [1] : vector<8x324xf32> to vector<8xf32>
    %77 = vector.shape_cast %76 : vector<8xf32> to vector<8x1xf32>
    %78 = arith.mulf %58, %58 : vector<8x324xf32>
    %cst_60 = arith.constant dense<0.000000e+00> : vector<8xf32>
    %79 = vector.multi_reduction <add>, %78, %cst_60 [1] : vector<8x324xf32> to vector<8xf32>
    %80 = vector.shape_cast %79 : vector<8xf32> to vector<8x1xf32>
    %81 = tpu.concatenate %77, %80 in 1 : vector<8x1xf32>, vector<8x1xf32> -> vector<8x2xf32>
    %82 = arith.addf %75, %81 : vector<8x2xf32>
    %c0_61 = arith.constant 0 : index
    %c0_62 = arith.constant 0 : index
    %c0_63 = arith.constant 0 : index
    %83 = vector.load %arg11[%c0_61, %c0_62, %c0_63] : memref<1x8x2xf32, #tpu.memory_space<vmem>>, vector<1x8x2xf32>
    %84 = vector.shape_cast %83 : vector<1x8x2xf32> to vector<8x2xf32>
    %85 = vector.shape_cast %82 : vector<8x2xf32> to vector<1x8x2xf32>
    tpu.vector_store %arg11[%c0_61, %c0_62, %c0_63], %85 {strides = array<i32>} : memref<1x8x2xf32, #tpu.memory_space<vmem>>, vector<1x8x2xf32>,
    %86 = arith.truncf %53 : vector<8x324xf32> to vector<8x324xbf16>
    %c0_64 = arith.constant 0 : index
    %c0_65 = arith.constant 0 : index
    %c0_66 = arith.constant 0 : index
    %c0_67 = arith.constant 0 : index
    %87 = vector.load %arg8[%c0_64, %c0_65, %c0_66, %c0_67] : memref<1x1x8x324xbf16, #tpu.memory_space<vmem>>, vector<1x1x8x324xbf16>
    %88 = vector.shape_cast %87 : vector<1x1x8x324xbf16> to vector<8x324xbf16>
    %89 = vector.shape_cast %86 : vector<8x324xbf16> to vector<1x1x8x324xbf16>
    tpu.vector_store %arg8[%c0_64, %c0_65, %c0_66, %c0_67], %89 {strides = array<i32>} : memref<1x1x8x324xbf16, #tpu.memory_space<vmem>>, vector<1x1x8x324xbf16>,
    %90 = arith.truncf %58 : vector<8x324xf32> to vector<8x324xbf16>
    %c0_68 = arith.constant 0 : index
    %c0_69 = arith.constant 0 : index
    %c0_70 = arith.constant 0 : index
    %c0_71 = arith.constant 0 : index
    %91 = vector.load %arg9[%c0_68, %c0_69, %c0_70, %c0_71] : memref<1x1x8x324xbf16, #tpu.memory_space<vmem>>, vector<1x1x8x324xbf16>
    %92 = vector.shape_cast %91 : vector<1x1x8x324xbf16> to vector<8x324xbf16>
    %93 = vector.shape_cast %90 : vector<8x324xbf16> to vector<1x1x8x324xbf16>
    tpu.vector_store %arg9[%c0_68, %c0_69, %c0_70, %c0_71], %93 {strides = array<i32>} : memref<1x1x8x324xbf16, #tpu.memory_space<vmem>>, vector<1x1x8x324xbf16>,
    return
  }
  func.func @transform_0(%arg0: i32, %arg1: i32) -> (i32, i32, i32, i32) {
    %c0_i32 = arith.constant 0 : i32
    %c0_i32_0 = arith.constant 0 : i32
    %c0_i32_1 = arith.constant 0 : i32
    return %arg0, %arg1, %c0_i32, %c0_i32_0 : i32, i32, i32, i32
  }
  func.func @transform_1(%arg0: i32, %arg1: i32) -> (i32, i32, i32, i32) {
    %c1_i32 = arith.constant 1 : i32
    %0 = arith.addi %arg1, %c1_i32 : i32
    %c0_i32 = arith.constant 0 : i32
    %c0_i32_0 = arith.constant 0 : i32
    %c0_i32_1 = arith.constant 0 : i32
    return %arg0, %0, %c0_i32, %c0_i32_0 : i32, i32, i32, i32
  }
  func.func @transform_2(%arg0: i32, %arg1: i32) -> (i32, i32, i32, i32) {
    %c2_i32 = arith.constant 2 : i32
    %0 = arith.addi %arg1, %c2_i32 : i32
    %c0_i32 = arith.constant 0 : i32
    %c0_i32_0 = arith.constant 0 : i32
    %c0_i32_1 = arith.constant 0 : i32
    return %arg0, %0, %c0_i32, %c0_i32_0 : i32, i32, i32, i32
  }
  func.func @transform_3(%arg0: i32, %arg1: i32) -> (i32, i32, i32) {
    %c0_i32 = arith.constant 0 : i32
    %c0_i32_0 = arith.constant 0 : i32
    %c0_i32_1 = arith.constant 0 : i32
    %c0_i32_2 = arith.constant 0 : i32
    return %c0_i32, %c0_i32_0, %c0_i32_1 : i32, i32, i32
  }
  func.func @transform_4(%arg0: i32, %arg1: i32) -> (i32, i32) {
    %c0_i32 = arith.constant 0 : i32
    %c0_i32_0 = arith.constant 0 : i32
    %c0_i32_1 = arith.constant 0 : i32
    return %c0_i32, %c0_i32_0 : i32, i32
  }
  func.func @transform_5(%arg0: i32, %arg1: i32) -> (i32, i32) {
    %c0_i32 = arith.constant 0 : i32
    %c0_i32_0 = arith.constant 0 : i32
    %c0_i32_1 = arith.constant 0 : i32
    return %c0_i32, %c0_i32_0 : i32, i32
  }
  func.func @transform_6(%arg0: i32, %arg1: i32) -> (i32, i32, i32, i32) {
    %c0_i32 = arith.constant 0 : i32
    %c0_i32_0 = arith.constant 0 : i32
    %c0_i32_1 = arith.constant 0 : i32
    return %arg0, %arg1, %c0_i32, %c0_i32_0 : i32, i32, i32, i32
  }
  func.func @transform_7(%arg0: i32, %arg1: i32) -> (i32, i32, i32, i32) {
    %c0_i32 = arith.constant 0 : i32
    %c0_i32_0 = arith.constant 0 : i32
    %c0_i32_1 = arith.constant 0 : i32
    return %arg0, %arg1, %c0_i32, %c0_i32_0 : i32, i32, i32, i32
  }
  func.func @transform_8(%arg0: i32, %arg1: i32) -> (i32, i32, i32) {
    %c0_i32 = arith.constant 0 : i32
    %c0_i32_0 = arith.constant 0 : i32
    %c0_i32_1 = arith.constant 0 : i32
    return %arg0, %c0_i32, %c0_i32_0 : i32, i32, i32
  }
  func.func @transform_9(%arg0: i32, %arg1: i32) -> (i32, i32, i32) {
    %c0_i32 = arith.constant 0 : i32
    %c0_i32_0 = arith.constant 0 : i32
    %c0_i32_1 = arith.constant 0 : i32
    return %arg0, %c0_i32, %c0_i32_0 : i32, i32, i32
  }
}

module attributes {stable_mosaic.version = 11 : i64} {
  func.func @_pass_b_kernel(%arg0: i32, %arg1: i32, %arg2: memref<1x1x8x324xbf16, #tpu.memory_space<vmem>>, %arg3: memref<1x1x8x324xbf16, #tpu.memory_space<vmem>>, %arg4: memref<1x1x8x324xbf16, #tpu.memory_space<vmem>>, %arg5: memref<1x8x2xf32, #tpu.memory_space<vmem>>, %arg6: memref<9x8x24xbf16, #tpu.memory_space<vmem>>, %arg7: memref<1x324xf32, #tpu.memory_space<vmem>>, %arg8: memref<1x1x8x324xbf16, #tpu.memory_space<vmem>>, %arg9: memref<1x8x2xf32, #tpu.memory_space<vmem>>) attributes {dimension_semantics = [#tpu.dimension_semantics<parallel>, #tpu.dimension_semantics<arbitrary>], iteration_bounds = array<i64: 2, 16>, scalar_prefetch = 0 : i64, scratch_operands = 0 : i64, tpu.core_type = #tpu.core_type<tc>, window_params = [{transform_indices = @transform_0, window_bounds = array<i64: 1, 1, 8, 324>}, {transform_indices = @transform_1, window_bounds = array<i64: 1, 1, 8, 324>}, {transform_indices = @transform_2, window_bounds = array<i64: 1, 1, 8, 324>}, {transform_indices = @transform_3, window_bounds = array<i64: 1, 8, 2>}, {pipeline_mode = #tpu.pipeline_mode<synchronous>, transform_indices = @transform_4, window_bounds = array<i64: 9, 8, 24>}, {pipeline_mode = #tpu.pipeline_mode<synchronous>, transform_indices = @transform_5, window_bounds = array<i64: 1, 324>}, {transform_indices = @transform_6, window_bounds = array<i64: 1, 1, 8, 324>}, {transform_indices = @transform_7, window_bounds = array<i64: 1, 8, 2>}]} {
    %c0_i32 = arith.constant 0 : i32
    %0 = arith.cmpi eq, %arg1, %c0_i32 : i32
    %1 = arith.extui %0 : i1 to i32
    %c0_i32_0 = arith.constant 0 : i32
    %2 = arith.cmpi ne, %1, %c0_i32_0 : i32
    scf.if %2 {
      %cst_64 = arith.constant 0.000000e+00 : f32
      %128 = vector.broadcast %cst_64 : f32 to vector<1x8x2xf32>
      %c0_65 = arith.constant 0 : index
      %c0_66 = arith.constant 0 : index
      %c0_67 = arith.constant 0 : index
      %129 = vector.load %arg9[%c0_65, %c0_66, %c0_67] : memref<1x8x2xf32, #tpu.memory_space<vmem>>, vector<1x8x2xf32>
      tpu.vector_store %arg9[%c0_65, %c0_66, %c0_67], %128 {strides = array<i32>} : memref<1x8x2xf32, #tpu.memory_space<vmem>>, vector<1x8x2xf32>,
    } else {
    }
    %c0 = arith.constant 0 : index
    %c0_1 = arith.constant 0 : index
    %c0_2 = arith.constant 0 : index
    %3 = vector.load %arg5[%c0, %c0_1, %c0_2] : memref<1x8x2xf32, #tpu.memory_space<vmem>>, vector<1x8x2xf32>
    %4 = vector.shape_cast %3 : vector<1x8x2xf32> to vector<8x2xf32>
    %5 = vector.extract_strided_slice %4 {offsets = [0, 0], sizes = [8, 1], strides = [1, 1]} : vector<8x2xf32> to vector<8x1xf32>
    %cst = arith.constant 2.44140625E-4 : f32
    %6 = vector.broadcast %cst : f32 to vector<8x1xf32>
    %7 = arith.mulf %5, %6 : vector<8x1xf32>
    %8 = vector.extract_strided_slice %4 {offsets = [0, 1], sizes = [8, 1], strides = [1, 1]} : vector<8x2xf32> to vector<8x1xf32>
    %cst_3 = arith.constant 2.44140625E-4 : f32
    %9 = vector.broadcast %cst_3 : f32 to vector<8x1xf32>
    %10 = arith.mulf %8, %9 : vector<8x1xf32>
    %11 = arith.mulf %7, %7 : vector<8x1xf32>
    %12 = arith.subf %10, %11 : vector<8x1xf32>
    %cst_4 = arith.constant 9.99999974E-6 : f32
    %13 = vector.broadcast %cst_4 : f32 to vector<8x1xf32>
    %14 = arith.addf %12, %13 : vector<8x1xf32>
    %15 = math.rsqrt %14 : vector<8x1xf32>
    %c0_5 = arith.constant 0 : index
    %c0_6 = arith.constant 0 : index
    %16 = vector.load %arg7[%c0_5, %c0_6] : memref<1x324xf32, #tpu.memory_space<vmem>>, vector<1x324xf32>
    %c0_i32_7 = arith.constant 0 : i32
    %17 = arith.cmpi sgt, %arg1, %c0_i32_7 : i32
    %18 = arith.extui %17 : i1 to i32
    %19 = arith.sitofp %18 : i32 to f32
    %20 = vector.broadcast %19 : f32 to vector<1x324xf32>
    %21 = arith.mulf %16, %20 : vector<1x324xf32>
    %c15_i32 = arith.constant 15 : i32
    %22 = arith.cmpi slt, %arg1, %c15_i32 : i32
    %23 = arith.extui %22 : i1 to i32
    %24 = arith.sitofp %23 : i32 to f32
    %25 = vector.broadcast %24 : f32 to vector<1x324xf32>
    %26 = arith.mulf %16, %25 : vector<1x324xf32>
    %c0_8 = arith.constant 0 : index
    %c0_9 = arith.constant 0 : index
    %c0_10 = arith.constant 0 : index
    %c0_11 = arith.constant 0 : index
    %27 = vector.load %arg2[%c0_8, %c0_9, %c0_10, %c0_11] : memref<1x1x8x324xbf16, #tpu.memory_space<vmem>>, vector<1x1x8x324xbf16>
    %28 = vector.shape_cast %27 : vector<1x1x8x324xbf16> to vector<8x324xbf16>
    %c0_12 = arith.constant 0 : index
    %c0_13 = arith.constant 0 : index
    %c0_14 = arith.constant 0 : index
    %c0_15 = arith.constant 0 : index
    %29 = vector.load %arg3[%c0_12, %c0_13, %c0_14, %c0_15] : memref<1x1x8x324xbf16, #tpu.memory_space<vmem>>, vector<1x1x8x324xbf16>
    %30 = vector.shape_cast %29 : vector<1x1x8x324xbf16> to vector<8x324xbf16>
    %c0_16 = arith.constant 0 : index
    %c0_17 = arith.constant 0 : index
    %c0_18 = arith.constant 0 : index
    %c0_19 = arith.constant 0 : index
    %31 = vector.load %arg4[%c0_16, %c0_17, %c0_18, %c0_19] : memref<1x1x8x324xbf16, #tpu.memory_space<vmem>>, vector<1x1x8x324xbf16>
    %32 = vector.shape_cast %31 : vector<1x1x8x324xbf16> to vector<8x324xbf16>
    %33 = arith.extf %28 : vector<8x324xbf16> to vector<8x324xf32>
    %34 = vector.broadcast %7 : vector<8x1xf32> to vector<8x324xf32>
    %35 = arith.subf %33, %34 : vector<8x324xf32>
    %36 = vector.broadcast %15 : vector<8x1xf32> to vector<8x324xf32>
    %37 = arith.mulf %35, %36 : vector<8x324xf32>
    %cst_20 = arith.constant 0.000000e+00 : f32
    %38 = vector.broadcast %cst_20 : f32 to vector<8x324xf32>
    %39 = arith.maximumf %37, %38 : vector<8x324xf32>
    %40 = vector.broadcast %21 : vector<1x324xf32> to vector<8x324xf32>
    %41 = arith.mulf %39, %40 : vector<8x324xf32>
    %42 = arith.truncf %41 : vector<8x324xf32> to vector<8x324xbf16>
    %43 = arith.extf %30 : vector<8x324xbf16> to vector<8x324xf32>
    %44 = vector.broadcast %7 : vector<8x1xf32> to vector<8x324xf32>
    %45 = arith.subf %43, %44 : vector<8x324xf32>
    %46 = vector.broadcast %15 : vector<8x1xf32> to vector<8x324xf32>
    %47 = arith.mulf %45, %46 : vector<8x324xf32>
    %cst_21 = arith.constant 0.000000e+00 : f32
    %48 = vector.broadcast %cst_21 : f32 to vector<8x324xf32>
    %49 = arith.maximumf %47, %48 : vector<8x324xf32>
    %50 = vector.broadcast %16 : vector<1x324xf32> to vector<8x324xf32>
    %51 = arith.mulf %49, %50 : vector<8x324xf32>
    %52 = arith.truncf %51 : vector<8x324xf32> to vector<8x324xbf16>
    %53 = arith.extf %32 : vector<8x324xbf16> to vector<8x324xf32>
    %54 = vector.broadcast %7 : vector<8x1xf32> to vector<8x324xf32>
    %55 = arith.subf %53, %54 : vector<8x324xf32>
    %56 = vector.broadcast %15 : vector<8x1xf32> to vector<8x324xf32>
    %57 = arith.mulf %55, %56 : vector<8x324xf32>
    %cst_22 = arith.constant 0.000000e+00 : f32
    %58 = vector.broadcast %cst_22 : f32 to vector<8x324xf32>
    %59 = arith.maximumf %57, %58 : vector<8x324xf32>
    %60 = vector.broadcast %26 : vector<1x324xf32> to vector<8x324xf32>
    %61 = arith.mulf %59, %60 : vector<8x324xf32>
    %62 = arith.truncf %61 : vector<8x324xf32> to vector<8x324xbf16>
    %63 = tpu.concatenate %42, %52, %62 in 0 : vector<8x324xbf16>, vector<8x324xbf16>, vector<8x324xbf16> -> vector<24x324xbf16>
    %cst_23 = arith.constant 0.000000e+00 : bf16
    %64 = vector.broadcast %cst_23 : bf16 to vector<24x19xbf16>
    %65 = tpu.concatenate %64, %63, %64 in 1 : vector<24x19xbf16>, vector<24x324xbf16>, vector<24x19xbf16> -> vector<24x362xbf16>
    %66 = vector.extract_strided_slice %65 {offsets = [0, 0], sizes = [24, 324], strides = [1, 1]} : vector<24x362xbf16> to vector<24x324xbf16>
    %c0_24 = arith.constant 0 : index
    %c0_25 = arith.constant 0 : index
    %c0_26 = arith.constant 0 : index
    %67 = vector.load %arg6[%c0_24, %c0_25, %c0_26] : memref<9x8x24xbf16, #tpu.memory_space<vmem>>, vector<1x8x24xbf16>
    %68 = vector.shape_cast %67 : vector<1x8x24xbf16> to vector<8x24xbf16>
    %cst_27 = arith.constant dense<0.000000e+00> : vector<8x324xf32>
    %69 = tpu.matmul %68, %66, %cst_27 {dimension_numbers = #tpu.dot_dimension_numbers<[1], [0], [0], [1], [0, 0, 1, 1], [], []>} : vector<8x24xbf16>, vector<24x324xbf16>, vector<8x324xf32> -> vector<8x324xf32>
    %70 = vector.extract_strided_slice %65 {offsets = [0, 1], sizes = [24, 324], strides = [1, 1]} : vector<24x362xbf16> to vector<24x324xbf16>
    %c1 = arith.constant 1 : index
    %c0_28 = arith.constant 0 : index
    %c0_29 = arith.constant 0 : index
    %71 = vector.load %arg6[%c1, %c0_28, %c0_29] : memref<9x8x24xbf16, #tpu.memory_space<vmem>>, vector<1x8x24xbf16>
    %72 = vector.shape_cast %71 : vector<1x8x24xbf16> to vector<8x24xbf16>
    %cst_30 = arith.constant dense<0.000000e+00> : vector<8x324xf32>
    %73 = tpu.matmul %72, %70, %cst_30 {dimension_numbers = #tpu.dot_dimension_numbers<[1], [0], [0], [1], [0, 0, 1, 1], [], []>} : vector<8x24xbf16>, vector<24x324xbf16>, vector<8x324xf32> -> vector<8x324xf32>
    %74 = arith.addf %69, %73 : vector<8x324xf32>
    %75 = vector.extract_strided_slice %65 {offsets = [0, 2], sizes = [24, 324], strides = [1, 1]} : vector<24x362xbf16> to vector<24x324xbf16>
    %c2 = arith.constant 2 : index
    %c0_31 = arith.constant 0 : index
    %c0_32 = arith.constant 0 : index
    %76 = vector.load %arg6[%c2, %c0_31, %c0_32] : memref<9x8x24xbf16, #tpu.memory_space<vmem>>, vector<1x8x24xbf16>
    %77 = vector.shape_cast %76 : vector<1x8x24xbf16> to vector<8x24xbf16>
    %cst_33 = arith.constant dense<0.000000e+00> : vector<8x324xf32>
    %78 = tpu.matmul %77, %75, %cst_33 {dimension_numbers = #tpu.dot_dimension_numbers<[1], [0], [0], [1], [0, 0, 1, 1], [], []>} : vector<8x24xbf16>, vector<24x324xbf16>, vector<8x324xf32> -> vector<8x324xf32>
    %79 = arith.addf %74, %78 : vector<8x324xf32>
    %80 = vector.extract_strided_slice %65 {offsets = [0, 18], sizes = [24, 324], strides = [1, 1]} : vector<24x362xbf16> to vector<24x324xbf16>
    %c3 = arith.constant 3 : index
    %c0_34 = arith.constant 0 : index
    %c0_35 = arith.constant 0 : index
    %81 = vector.load %arg6[%c3, %c0_34, %c0_35] : memref<9x8x24xbf16, #tpu.memory_space<vmem>>, vector<1x8x24xbf16>
    %82 = vector.shape_cast %81 : vector<1x8x24xbf16> to vector<8x24xbf16>
    %cst_36 = arith.constant dense<0.000000e+00> : vector<8x324xf32>
    %83 = tpu.matmul %82, %80, %cst_36 {dimension_numbers = #tpu.dot_dimension_numbers<[1], [0], [0], [1], [0, 0, 1, 1], [], []>} : vector<8x24xbf16>, vector<24x324xbf16>, vector<8x324xf32> -> vector<8x324xf32>
    %84 = arith.addf %79, %83 : vector<8x324xf32>
    %85 = vector.extract_strided_slice %65 {offsets = [0, 19], sizes = [24, 324], strides = [1, 1]} : vector<24x362xbf16> to vector<24x324xbf16>
    %c4 = arith.constant 4 : index
    %c0_37 = arith.constant 0 : index
    %c0_38 = arith.constant 0 : index
    %86 = vector.load %arg6[%c4, %c0_37, %c0_38] : memref<9x8x24xbf16, #tpu.memory_space<vmem>>, vector<1x8x24xbf16>
    %87 = vector.shape_cast %86 : vector<1x8x24xbf16> to vector<8x24xbf16>
    %cst_39 = arith.constant dense<0.000000e+00> : vector<8x324xf32>
    %88 = tpu.matmul %87, %85, %cst_39 {dimension_numbers = #tpu.dot_dimension_numbers<[1], [0], [0], [1], [0, 0, 1, 1], [], []>} : vector<8x24xbf16>, vector<24x324xbf16>, vector<8x324xf32> -> vector<8x324xf32>
    %89 = arith.addf %84, %88 : vector<8x324xf32>
    %90 = vector.extract_strided_slice %65 {offsets = [0, 20], sizes = [24, 324], strides = [1, 1]} : vector<24x362xbf16> to vector<24x324xbf16>
    %c5 = arith.constant 5 : index
    %c0_40 = arith.constant 0 : index
    %c0_41 = arith.constant 0 : index
    %91 = vector.load %arg6[%c5, %c0_40, %c0_41] : memref<9x8x24xbf16, #tpu.memory_space<vmem>>, vector<1x8x24xbf16>
    %92 = vector.shape_cast %91 : vector<1x8x24xbf16> to vector<8x24xbf16>
    %cst_42 = arith.constant dense<0.000000e+00> : vector<8x324xf32>
    %93 = tpu.matmul %92, %90, %cst_42 {dimension_numbers = #tpu.dot_dimension_numbers<[1], [0], [0], [1], [0, 0, 1, 1], [], []>} : vector<8x24xbf16>, vector<24x324xbf16>, vector<8x324xf32> -> vector<8x324xf32>
    %94 = arith.addf %89, %93 : vector<8x324xf32>
    %95 = vector.extract_strided_slice %65 {offsets = [0, 36], sizes = [24, 324], strides = [1, 1]} : vector<24x362xbf16> to vector<24x324xbf16>
    %c6 = arith.constant 6 : index
    %c0_43 = arith.constant 0 : index
    %c0_44 = arith.constant 0 : index
    %96 = vector.load %arg6[%c6, %c0_43, %c0_44] : memref<9x8x24xbf16, #tpu.memory_space<vmem>>, vector<1x8x24xbf16>
    %97 = vector.shape_cast %96 : vector<1x8x24xbf16> to vector<8x24xbf16>
    %cst_45 = arith.constant dense<0.000000e+00> : vector<8x324xf32>
    %98 = tpu.matmul %97, %95, %cst_45 {dimension_numbers = #tpu.dot_dimension_numbers<[1], [0], [0], [1], [0, 0, 1, 1], [], []>} : vector<8x24xbf16>, vector<24x324xbf16>, vector<8x324xf32> -> vector<8x324xf32>
    %99 = arith.addf %94, %98 : vector<8x324xf32>
    %100 = vector.extract_strided_slice %65 {offsets = [0, 37], sizes = [24, 324], strides = [1, 1]} : vector<24x362xbf16> to vector<24x324xbf16>
    %c7 = arith.constant 7 : index
    %c0_46 = arith.constant 0 : index
    %c0_47 = arith.constant 0 : index
    %101 = vector.load %arg6[%c7, %c0_46, %c0_47] : memref<9x8x24xbf16, #tpu.memory_space<vmem>>, vector<1x8x24xbf16>
    %102 = vector.shape_cast %101 : vector<1x8x24xbf16> to vector<8x24xbf16>
    %cst_48 = arith.constant dense<0.000000e+00> : vector<8x324xf32>
    %103 = tpu.matmul %102, %100, %cst_48 {dimension_numbers = #tpu.dot_dimension_numbers<[1], [0], [0], [1], [0, 0, 1, 1], [], []>} : vector<8x24xbf16>, vector<24x324xbf16>, vector<8x324xf32> -> vector<8x324xf32>
    %104 = arith.addf %99, %103 : vector<8x324xf32>
    %105 = vector.extract_strided_slice %65 {offsets = [0, 38], sizes = [24, 324], strides = [1, 1]} : vector<24x362xbf16> to vector<24x324xbf16>
    %c8 = arith.constant 8 : index
    %c0_49 = arith.constant 0 : index
    %c0_50 = arith.constant 0 : index
    %106 = vector.load %arg6[%c8, %c0_49, %c0_50] : memref<9x8x24xbf16, #tpu.memory_space<vmem>>, vector<1x8x24xbf16>
    %107 = vector.shape_cast %106 : vector<1x8x24xbf16> to vector<8x24xbf16>
    %cst_51 = arith.constant dense<0.000000e+00> : vector<8x324xf32>
    %108 = tpu.matmul %107, %105, %cst_51 {dimension_numbers = #tpu.dot_dimension_numbers<[1], [0], [0], [1], [0, 0, 1, 1], [], []>} : vector<8x24xbf16>, vector<24x324xbf16>, vector<8x324xf32> -> vector<8x324xf32>
    %109 = arith.addf %104, %108 : vector<8x324xf32>
    %110 = vector.broadcast %16 : vector<1x324xf32> to vector<8x324xf32>
    %111 = arith.mulf %109, %110 : vector<8x324xf32>
    %c0_52 = arith.constant 0 : index
    %c0_53 = arith.constant 0 : index
    %c0_54 = arith.constant 0 : index
    %112 = vector.load %arg9[%c0_52, %c0_53, %c0_54] : memref<1x8x2xf32, #tpu.memory_space<vmem>>, vector<1x8x2xf32>
    %113 = vector.shape_cast %112 : vector<1x8x2xf32> to vector<8x2xf32>
    %cst_55 = arith.constant dense<0.000000e+00> : vector<8xf32>
    %114 = vector.multi_reduction <add>, %111, %cst_55 [1] : vector<8x324xf32> to vector<8xf32>
    %115 = vector.shape_cast %114 : vector<8xf32> to vector<8x1xf32>
    %116 = arith.mulf %111, %109 : vector<8x324xf32>
    %cst_56 = arith.constant dense<0.000000e+00> : vector<8xf32>
    %117 = vector.multi_reduction <add>, %116, %cst_56 [1] : vector<8x324xf32> to vector<8xf32>
    %118 = vector.shape_cast %117 : vector<8xf32> to vector<8x1xf32>
    %119 = tpu.concatenate %115, %118 in 1 : vector<8x1xf32>, vector<8x1xf32> -> vector<8x2xf32>
    %120 = arith.addf %113, %119 : vector<8x2xf32>
    %c0_57 = arith.constant 0 : index
    %c0_58 = arith.constant 0 : index
    %c0_59 = arith.constant 0 : index
    %121 = vector.load %arg9[%c0_57, %c0_58, %c0_59] : memref<1x8x2xf32, #tpu.memory_space<vmem>>, vector<1x8x2xf32>
    %122 = vector.shape_cast %121 : vector<1x8x2xf32> to vector<8x2xf32>
    %123 = vector.shape_cast %120 : vector<8x2xf32> to vector<1x8x2xf32>
    tpu.vector_store %arg9[%c0_57, %c0_58, %c0_59], %123 {strides = array<i32>} : memref<1x8x2xf32, #tpu.memory_space<vmem>>, vector<1x8x2xf32>,
    %124 = arith.truncf %109 : vector<8x324xf32> to vector<8x324xbf16>
    %c0_60 = arith.constant 0 : index
    %c0_61 = arith.constant 0 : index
    %c0_62 = arith.constant 0 : index
    %c0_63 = arith.constant 0 : index
    %125 = vector.load %arg8[%c0_60, %c0_61, %c0_62, %c0_63] : memref<1x1x8x324xbf16, #tpu.memory_space<vmem>>, vector<1x1x8x324xbf16>
    %126 = vector.shape_cast %125 : vector<1x1x8x324xbf16> to vector<8x324xbf16>
    %127 = vector.shape_cast %124 : vector<8x324xbf16> to vector<1x1x8x324xbf16>
    tpu.vector_store %arg8[%c0_60, %c0_61, %c0_62, %c0_63], %127 {strides = array<i32>} : memref<1x1x8x324xbf16, #tpu.memory_space<vmem>>, vector<1x1x8x324xbf16>,
    return
  }
  func.func @transform_0(%arg0: i32, %arg1: i32) -> (i32, i32, i32, i32) {
    %c1_i32 = arith.constant 1 : i32
    %0 = arith.subi %arg1, %c1_i32 : i32
    %c0_i32 = arith.constant 0 : i32
    %1 = arith.maxsi %0, %c0_i32 : i32
    %c0_i32_0 = arith.constant 0 : i32
    %c0_i32_1 = arith.constant 0 : i32
    %c0_i32_2 = arith.constant 0 : i32
    return %arg0, %1, %c0_i32_0, %c0_i32_1 : i32, i32, i32, i32
  }
  func.func @transform_1(%arg0: i32, %arg1: i32) -> (i32, i32, i32, i32) {
    %c0_i32 = arith.constant 0 : i32
    %c0_i32_0 = arith.constant 0 : i32
    %c0_i32_1 = arith.constant 0 : i32
    return %arg0, %arg1, %c0_i32, %c0_i32_0 : i32, i32, i32, i32
  }
  func.func @transform_2(%arg0: i32, %arg1: i32) -> (i32, i32, i32, i32) {
    %c1_i32 = arith.constant 1 : i32
    %0 = arith.addi %arg1, %c1_i32 : i32
    %c15_i32 = arith.constant 15 : i32
    %1 = arith.minsi %0, %c15_i32 : i32
    %c0_i32 = arith.constant 0 : i32
    %c0_i32_0 = arith.constant 0 : i32
    %c0_i32_1 = arith.constant 0 : i32
    return %arg0, %1, %c0_i32, %c0_i32_0 : i32, i32, i32, i32
  }
  func.func @transform_3(%arg0: i32, %arg1: i32) -> (i32, i32, i32) {
    %c0_i32 = arith.constant 0 : i32
    %c0_i32_0 = arith.constant 0 : i32
    %c0_i32_1 = arith.constant 0 : i32
    return %arg0, %c0_i32, %c0_i32_0 : i32, i32, i32
  }
  func.func @transform_4(%arg0: i32, %arg1: i32) -> (i32, i32, i32) {
    %c0_i32 = arith.constant 0 : i32
    %c0_i32_0 = arith.constant 0 : i32
    %c0_i32_1 = arith.constant 0 : i32
    %c0_i32_2 = arith.constant 0 : i32
    return %c0_i32, %c0_i32_0, %c0_i32_1 : i32, i32, i32
  }
  func.func @transform_5(%arg0: i32, %arg1: i32) -> (i32, i32) {
    %c0_i32 = arith.constant 0 : i32
    %c0_i32_0 = arith.constant 0 : i32
    %c0_i32_1 = arith.constant 0 : i32
    return %c0_i32, %c0_i32_0 : i32, i32
  }
  func.func @transform_6(%arg0: i32, %arg1: i32) -> (i32, i32, i32, i32) {
    %c0_i32 = arith.constant 0 : i32
    %c0_i32_0 = arith.constant 0 : i32
    %c0_i32_1 = arith.constant 0 : i32
    return %arg0, %arg1, %c0_i32, %c0_i32_0 : i32, i32, i32, i32
  }
  func.func @transform_7(%arg0: i32, %arg1: i32) -> (i32, i32, i32) {
    %c0_i32 = arith.constant 0 : i32
    %c0_i32_0 = arith.constant 0 : i32
    %c0_i32_1 = arith.constant 0 : i32
    return %arg0, %c0_i32, %c0_i32_0 : i32, i32, i32
  }
}

module attributes {stable_mosaic.version = 11 : i64} {
  func.func @_pass_c_kernel(%arg0: i32, %arg1: i32, %arg2: memref<1x1x8x324xbf16, #tpu.memory_space<vmem>>, %arg3: memref<1x1x8x324xbf16, #tpu.memory_space<vmem>>, %arg4: memref<1x8x2xf32, #tpu.memory_space<vmem>>, %arg5: memref<1x8x2xf32, #tpu.memory_space<vmem>>, %arg6: memref<1x1x8x324xf32, #tpu.memory_space<vmem>>) attributes {dimension_semantics = [#tpu.dimension_semantics<parallel>, #tpu.dimension_semantics<parallel>], iteration_bounds = array<i64: 2, 16>, scalar_prefetch = 0 : i64, scratch_operands = 0 : i64, tpu.core_type = #tpu.core_type<tc>, window_params = [{transform_indices = @transform_0, window_bounds = array<i64: 1, 1, 8, 324>}, {transform_indices = @transform_1, window_bounds = array<i64: 1, 1, 8, 324>}, {transform_indices = @transform_2, window_bounds = array<i64: 1, 8, 2>}, {transform_indices = @transform_3, window_bounds = array<i64: 1, 8, 2>}, {transform_indices = @transform_4, window_bounds = array<i64: 1, 1, 8, 324>}]} {
    %c0 = arith.constant 0 : index
    %c0_0 = arith.constant 0 : index
    %c0_1 = arith.constant 0 : index
    %0 = vector.load %arg4[%c0, %c0_0, %c0_1] : memref<1x8x2xf32, #tpu.memory_space<vmem>>, vector<1x8x2xf32>
    %1 = vector.shape_cast %0 : vector<1x8x2xf32> to vector<8x2xf32>
    %2 = vector.extract_strided_slice %1 {offsets = [0, 0], sizes = [8, 1], strides = [1, 1]} : vector<8x2xf32> to vector<8x1xf32>
    %cst = arith.constant 2.44140625E-4 : f32
    %3 = vector.broadcast %cst : f32 to vector<8x1xf32>
    %4 = arith.mulf %2, %3 : vector<8x1xf32>
    %5 = vector.extract_strided_slice %1 {offsets = [0, 1], sizes = [8, 1], strides = [1, 1]} : vector<8x2xf32> to vector<8x1xf32>
    %cst_2 = arith.constant 2.44140625E-4 : f32
    %6 = vector.broadcast %cst_2 : f32 to vector<8x1xf32>
    %7 = arith.mulf %5, %6 : vector<8x1xf32>
    %8 = arith.mulf %4, %4 : vector<8x1xf32>
    %9 = arith.subf %7, %8 : vector<8x1xf32>
    %cst_3 = arith.constant 9.99999974E-6 : f32
    %10 = vector.broadcast %cst_3 : f32 to vector<8x1xf32>
    %11 = arith.addf %9, %10 : vector<8x1xf32>
    %12 = math.rsqrt %11 : vector<8x1xf32>
    %c0_4 = arith.constant 0 : index
    %c0_5 = arith.constant 0 : index
    %c0_6 = arith.constant 0 : index
    %13 = vector.load %arg5[%c0_4, %c0_5, %c0_6] : memref<1x8x2xf32, #tpu.memory_space<vmem>>, vector<1x8x2xf32>
    %14 = vector.shape_cast %13 : vector<1x8x2xf32> to vector<8x2xf32>
    %15 = vector.extract_strided_slice %14 {offsets = [0, 0], sizes = [8, 1], strides = [1, 1]} : vector<8x2xf32> to vector<8x1xf32>
    %cst_7 = arith.constant 2.44140625E-4 : f32
    %16 = vector.broadcast %cst_7 : f32 to vector<8x1xf32>
    %17 = arith.mulf %15, %16 : vector<8x1xf32>
    %18 = vector.extract_strided_slice %14 {offsets = [0, 1], sizes = [8, 1], strides = [1, 1]} : vector<8x2xf32> to vector<8x1xf32>
    %cst_8 = arith.constant 2.44140625E-4 : f32
    %19 = vector.broadcast %cst_8 : f32 to vector<8x1xf32>
    %20 = arith.mulf %18, %19 : vector<8x1xf32>
    %21 = arith.mulf %17, %17 : vector<8x1xf32>
    %22 = arith.subf %20, %21 : vector<8x1xf32>
    %cst_9 = arith.constant 9.99999974E-6 : f32
    %23 = vector.broadcast %cst_9 : f32 to vector<8x1xf32>
    %24 = arith.addf %22, %23 : vector<8x1xf32>
    %25 = math.rsqrt %24 : vector<8x1xf32>
    %c0_10 = arith.constant 0 : index
    %c0_11 = arith.constant 0 : index
    %c0_12 = arith.constant 0 : index
    %c0_13 = arith.constant 0 : index
    %26 = vector.load %arg2[%c0_10, %c0_11, %c0_12, %c0_13] : memref<1x1x8x324xbf16, #tpu.memory_space<vmem>>, vector<1x1x8x324xbf16>
    %27 = vector.shape_cast %26 : vector<1x1x8x324xbf16> to vector<8x324xbf16>
    %28 = arith.extf %27 : vector<8x324xbf16> to vector<8x324xf32>
    %29 = vector.broadcast %4 : vector<8x1xf32> to vector<8x324xf32>
    %30 = arith.subf %28, %29 : vector<8x324xf32>
    %31 = vector.broadcast %12 : vector<8x1xf32> to vector<8x324xf32>
    %32 = arith.mulf %30, %31 : vector<8x324xf32>
    %c0_14 = arith.constant 0 : index
    %c0_15 = arith.constant 0 : index
    %c0_16 = arith.constant 0 : index
    %c0_17 = arith.constant 0 : index
    %33 = vector.load %arg3[%c0_14, %c0_15, %c0_16, %c0_17] : memref<1x1x8x324xbf16, #tpu.memory_space<vmem>>, vector<1x1x8x324xbf16>
    %34 = vector.shape_cast %33 : vector<1x1x8x324xbf16> to vector<8x324xbf16>
    %35 = arith.extf %34 : vector<8x324xbf16> to vector<8x324xf32>
    %36 = vector.broadcast %17 : vector<8x1xf32> to vector<8x324xf32>
    %37 = arith.subf %35, %36 : vector<8x324xf32>
    %38 = vector.broadcast %25 : vector<8x1xf32> to vector<8x324xf32>
    %39 = arith.mulf %37, %38 : vector<8x324xf32>
    %40 = arith.addf %32, %39 : vector<8x324xf32>
    %cst_18 = arith.constant 0.000000e+00 : f32
    %41 = vector.broadcast %cst_18 : f32 to vector<8x324xf32>
    %42 = arith.maximumf %40, %41 : vector<8x324xf32>
    %c0_19 = arith.constant 0 : index
    %c0_20 = arith.constant 0 : index
    %c0_21 = arith.constant 0 : index
    %c0_22 = arith.constant 0 : index
    %43 = vector.load %arg6[%c0_19, %c0_20, %c0_21, %c0_22] : memref<1x1x8x324xf32, #tpu.memory_space<vmem>>, vector<1x1x8x324xf32>
    %44 = vector.shape_cast %43 : vector<1x1x8x324xf32> to vector<8x324xf32>
    %45 = vector.shape_cast %42 : vector<8x324xf32> to vector<1x1x8x324xf32>
    tpu.vector_store %arg6[%c0_19, %c0_20, %c0_21, %c0_22], %45 {strides = array<i32>} : memref<1x1x8x324xf32, #tpu.memory_space<vmem>>, vector<1x1x8x324xf32>,
    return
  }
  func.func @transform_0(%arg0: i32, %arg1: i32) -> (i32, i32, i32, i32) {
    %c0_i32 = arith.constant 0 : i32
    %c0_i32_0 = arith.constant 0 : i32
    %c0_i32_1 = arith.constant 0 : i32
    return %arg0, %arg1, %c0_i32, %c0_i32_0 : i32, i32, i32, i32
  }
  func.func @transform_1(%arg0: i32, %arg1: i32) -> (i32, i32, i32, i32) {
    %c0_i32 = arith.constant 0 : i32
    %c0_i32_0 = arith.constant 0 : i32
    %c0_i32_1 = arith.constant 0 : i32
    return %arg0, %arg1, %c0_i32, %c0_i32_0 : i32, i32, i32, i32
  }
  func.func @transform_2(%arg0: i32, %arg1: i32) -> (i32, i32, i32) {
    %c0_i32 = arith.constant 0 : i32
    %c0_i32_0 = arith.constant 0 : i32
    %c0_i32_1 = arith.constant 0 : i32
    return %arg0, %c0_i32, %c0_i32_0 : i32, i32, i32
  }
  func.func @transform_3(%arg0: i32, %arg1: i32) -> (i32, i32, i32) {
    %c0_i32 = arith.constant 0 : i32
    %c0_i32_0 = arith.constant 0 : i32
    %c0_i32_1 = arith.constant 0 : i32
    return %arg0, %c0_i32, %c0_i32_0 : i32, i32, i32
  }
  func.func @transform_4(%arg0: i32, %arg1: i32) -> (i32, i32, i32, i32) {
    %c0_i32 = arith.constant 0 : i32
    %c0_i32_0 = arith.constant 0 : i32
    %c0_i32_1 = arith.constant 0 : i32
    return %arg0, %arg1, %c0_i32, %c0_i32_0 : i32, i32, i32, i32
  }
}

</mosaic_0001>

<bundles_post_ra>
// kernel: res_two_layer_conv_block1.3
= control target key start
LH: loop header
LB: loop body
LE: loop exit
PB: predicated region body
PF: predicated region fallthrough
CT: control target
= control target key end

     0   :  { %s1685_s30 = smov 0   ;;  %s1687_s10 = smov 0   ;;  %s1937_s0 = inlined_call_operand.vmem [shape: bf16[2,18,4,362], index: 0, kind: input, shape index: {}, may-alias: {0,1,2}]   ;;  %s1938_s1 = inlined_call_operand.vmem [shape: bf16[2,18,4,362], index: 1, kind: input, shape index: {}, may-alias: {0,1,2}]   ;;  %s1939_s2 = inlined_call_operand.vmem [shape: bf16[2,18,4,362], index: 2, kind: input, shape index: {}, may-alias: {0,1,2}]   ;;  %s1940_s3 = inlined_call_operand.vmem [shape: bf16[9,8,12], index: 3, kind: input, shape index: {}]   ;;  %s1941_s4 = inlined_call_operand.vmem [shape: bf16[8,4], index: 4, kind: input, shape index: {}]   ;;  %s1942_s5 = inlined_call_operand.vmem [shape: f32[1,324], index: 5, kind: input, shape index: {}]   ;;  %s1943_s6 = inlined_call_operand.vmem [shape: bf16[2,16,8,324], index: 6, kind: output, shape index: {0}]   ;;  %s1944_s7 = inlined_call_operand.vmem [shape: bf16[2,16,8,324], index: 7, kind: output, shape index: {1}]   ;;  %s1945_s8 = inlined_call_operand.vmem [shape: f32[2,8,2], index: 8, kind: output, shape index: {2}]   ;;  %s1946_s9 = inlined_call_operand.vmem [shape: f32[2,8,2], index: 9, kind: output, shape index: {3}]  }
   0x1   :  { %1950 = sst [smem:[#allocation7_spill]] %s1937_s0  ;;  %s1689_s11 = smov 0  }
   0x2   :  { %1951 = sst [smem:[#allocation8_spill]] %s1941_s4  ;;  %s1691_s12 = smov 0  }
   0x3   :  { %1952 = sst [smem:[#allocation9_spill]] %s1942_s5  ;;  %s1693_s13 = smov 0  }
   0x4   :  { %1953 = sst [smem:[#allocation10_spill]] %s1945_s8 }
   0x5 LB: > { %1954 = sst [smem:[#allocation2_spill]] %s1616_s11  ;;  %s29_s14 = sadd.s32 1, %s1616_s11  ;;  %s1624_s13 = sphi %s1693_s13, %s20_s13   ;;  %s1620_s12 = sphi %s1691_s12, %s1968_s12   ;;  %s1616_s11 = sphi %s1689_s11, %s1967_s11   ;;  %s1612_s10 = sphi %s1687_s10, %s1966_s10   ;;  %s1608_s30 = sphi %s1685_s30, %s1965_s30  }
   0x6   : > { %1955 = sst [smem:[#allocation3_spill]] %s1620_s12  ;;  %s32_s15 = sadd.s32 1, %s1620_s12 }
   0x7   : > { %1956 = sst [smem:[#allocation4_spill]] %s1624_s13  ;;  %p30_p0 = scmp.ge.s32.totalorder %s29_s14, 16 }
   0x8   : > { %p1482_p1 = scmp.ge.s32.totalorder %s1624_s13, 1  ;;  %p356_p2 = scmp.lt.s32.totalorder %s1624_s13, 33 }
   0x9   : > { %s1970_s14 = smov (%p30_p0, %s29_s14), 0  ;;  %s1972_s15 = smov (!%p30_p0, %s32_s15), %s1620_s12 }
   0xa   : > { %1957 = sst [smem:[#allocation5_spill]] %s1970_s14  ;;  %p357_p3 = pnand %p1482_p1, %p356_p2 }
   0xb   : > { %p34_p4 = scmp.ge.s32.totalorder %s1972_s15, 2  ;;  %p437_p5 = scmp.lt.s32.totalorder (!%p357_p3), %s1612_s10, 1 }
   0xc   : > { %360 = sbr.rel (%p357_p3) target bundleno = 564 (0x234), region = 44  ;;  %p439_p6 = scmp.lt.s32.totalorder (!%p357_p3), %s1608_s30, 17 }
   0xd   : > { %s1974_s15 = smov (%p34_p4, %s1972_s15), 0  ;;  %s446_s16 = sadd.s32 (!%p357_p3), 1, %s1608_s30 }
   0xe   : > { %1958 = sst [smem:[#allocation6_spill]] %s1974_s15  ;;  %s457_s17 = sadd.s32 (!%p357_p3), 2, %s1608_s30 }
   0xf   : > { %p449_p7 = scmp.lt.s32.totalorder (!%p357_p3), %s446_s16, 17  ;;  %p1721_p8 = scmp.lt.s32.totalorder (!%p357_p3), %s457_s17, 17 }
  0x10   : > { %p470_p9 = scmp.lt.s32.totalorder (!%p357_p3), %s1608_s30, 15  ;;  %s1960_s0 = sld [smem:[#allocation7_spill]] (!%p357_p3) }
  0x11   : > { %s1976_s10 = smov (!%p437_p5, %s1612_s10), 1  ;;  %s1978_s16 = smov (!%p449_p7, %s446_s16), 17 }
  0x12   : > { %s440_s18 = scalar_select %p439_p6, %s1608_s30, 17 }
  0x13   : > { %s1532_s19 = smul.u32 54, %s1976_s10  ;;  %s1488_s15 = sshll.u32 %s1976_s10, 3 }
  0x14   : > { %s1531_s20 = smul.u32 3, %s440_s18  ;;  %s1961_s8 = sld [smem:[#allocation10_spill]] }
  0x15   : > { %s1533_s24 = smul.u32 3, %s1978_s16  ;;  %s1740_s16 = scalar_lea.vmem %s1946_s9, %s1488_s15 }
  0x16   : > { %s443_s22 = sadd.s32 %s1532_s19, %s1531_s20  ;;  %s1536_s28 = smul.u32 48, %s1976_s10 }
  0x17   : > { %s1483_s23 = sshll.u32 %s443_s22, 1  ;;  %s453_s29 = sadd.s32 %s1533_s24, %s1532_s19 }
  0x18   : > { %s445_s27 = scalar_lea.vmem %s1960_s0, %s1483_s23  ;;  %s1484_s14 = sshll.u32 %s453_s29, 1 }
  0x19   : > { %s455_s20 = scalar_lea.vmem %s1938_s1, %s1484_s14  ;;  %s1980_s17 = smov (!%p1721_p8, %s457_s17), 17 }
  0x1a   : > { %s1732_s11 = scalar_lea.vmem %s1961_s8, %s1488_s15  ;;  %s1534_s24 = smul.u32 3, %s1980_s17 }
  0x1b   : > { %s471_s23 = scalar_select %p470_p9, %s1608_s30, 15 }
  0x1c   : > { %s464_s25 = sadd.s32 %s1534_s24, %s1532_s19  ;;  %p1490_p10 = scmp.ne.s32.totalorder %s1608_s30, 0 }
  0x1d   : > { %s1535_s10 = smul.u32 3, %s471_s23  ;;  %s1485_s26 = sshll.u32 %s464_s25, 1 }
  0x1e   : > { %s466_s0 = scalar_lea.vmem %s1939_s2, %s1485_s26  ;;  %498 = sbr.rel (%p1490_p10) target bundleno = 38 (0x26), region = 48 }
  0x1f   : > { %s474_s29 = sadd.s32 %s1536_s28, %s1535_s10 }
  0x20   : > { %s1486_s8 = sshll.u32 %s474_s29, 2 }
  0x21   : > { %s1751_s14 = scalar_lea.vmem %s1943_s6, %s1486_s8  ;;  %s1756_s21 = scalar_lea.vmem %s1944_s7, %s1486_s8 }
  0x23   : > { %vm499_vm0 = vcmask 15360   ;;  %v1626_v0 = vmov 0.0  }
  0x24   : > { %500 = vst.msk [vmem:[%s1732_s11] sm:$0xff] %vm499_vm0, %v1626_v0 }
  0x25   : > { %501 = vst.msk [vmem:[%s1740_s16] sm:$0xff] %vm499_vm0, %v1626_v0 }
  0x26 PF: > { %v502_v1 = vld [vmem:[%s445_s27] sm:$0x3f]  ;;  %vm522_vm1 = vcmask 1041408   ;;  %vm526_vm2 = vcmask 1043456   ;;  %s1627_s8 = smov 127   ;;  %s1629_s30 = smov 110  }
  0x27   : > { %506 = vst [vmem:[#allocation1] ss:$4 sm:$0xff] %v502_v1  ;;  %v503_v2 = vld [vmem:[%s455_s20] sm:$0x3f]  ;;  %s1630_s17 = smov 109   ;;  %s1631_s19 = smov 108  }
  0x28   : > { %v504_v6 = vld [vmem:[%s466_s0] sm:$0x3f]  ;;  %s1628_s0 = smov 126   ;;  %s1632_s27 = smov 92   ;;  %vm549_vm3 = vcmask 1045504   ;;  %vm545_vm4 = vcmask 97280  }
  0x29   : > { %s1633_s28 = smov 91   ;;  %s1634_s20 = smov 90   ;;  %v1793_v22 = vld [vmem:[%s1940_s3] sm:$0xf]  ;;  %vm654_vm5 = vcmask 1031168   ;;  %vm542_vm6 = vcmask 1039360  }
  0x2a   : > { %v1803_v28 = vld [vmem:[%s1940_s3 + $0x8] sm:$0xf]  ;;  %v1491_v34 = vld [vmem:[%s1940_s3 + $0x4] sm:$0xf]  ;;  %v1816_v35 = vld [vmem:[%s1940_s3 + $0xc] sm:$0xf] }
  0x2b   : > { %vm719_vm7 = vcmask 900096   ;;  %vm784_vm8 = vcmask 891904   ;;  %vm849_vm9 = vcmask 883712   ;;  %vm914_vm10 = vcmask 752640   ;;  %s1963_s24 = sld [smem:[#allocation9_spill]] }
  0x2c   : > { %vm979_vm11 = vcmask 744448   ;;  %vm1044_vm12 = vcmask 736256   ;;  %vm1117_vm13 = vcmask 31744   ;;  %vm1220_vm14 = vcmask 551936  }
  0x2d   : > { %vm1182_vm15 = vcmask 556032   ;;  %vm1195_vm0 = vcmask 7168  }
  0x2e   : > { %v507_v3 = vld.sshfl [vmem:[#allocation1] sm:$0xff pattern:$0x73625140]  ;;  %v508_v4 = vld.sshfl [vmem:[#allocation1 + $0x8] sm:$0xff pattern:$0x73625140] }
  0x2f   : > { %v509_v5 = vld.sshfl [vmem:[#allocation1 + $0x10] sm:$0xff pattern:$0x73625140] }
  0x30   : > { %512 = vst [vmem:[#allocation1 + $0x1] ss:$4 sm:$0xff] %v503_v2 }
  0x37   : > { %v513_v7 = vld.sshfl [vmem:[#allocation1] sm:$0xff pattern:$0x73625140]  ;;  %v514_v8 = vld.sshfl [vmem:[#allocation1 + $0x8] sm:$0xff pattern:$0x73625140] }
  0x38   : > { %v515_v9 = vld.sshfl [vmem:[#allocation1 + $0x10] sm:$0xff pattern:$0x73625140]  ;;  %v523_v11 = vsel %vm522_vm1, %v507_v3, %v513_v7  ;;  %v524_v12 = vsel %vm522_vm1, %v508_v4, %v514_v8 }
  0x39   : > { %518 = vst [vmem:[#allocation1 + $0x2] ss:$4 sm:$0xff] %v504_v6  ;;  %v525_v10 = vsel %vm522_vm1, %v509_v5, %v515_v9  ;;  %v1510_v3 = vld [vmem:[%s1940_s3 + $0x14] sm:$0xf] }
  0x40   : > { %v521_v13 = vld.sshfl [vmem:[#allocation1 + $0x10] sm:$0xff pattern:$0x73625140]  ;;  %v519_v14 = vld.sshfl [vmem:[#allocation1] sm:$0xff pattern:$0x73625140] }
  0x41   : > { %v1764_v15 = vsel %vm526_vm2, %v525_v10, %v521_v13  ;;  %v527_v16 = vsel %vm526_vm2, %v523_v11, %v519_v14  ;;  %v520_v17 = vld.sshfl [vmem:[#allocation1 + $0x8] sm:$0xff pattern:$0x73625140] }
  0x42   : > { %540 = vrot.lane.b32.xlu1 %v1764_v15, %s1627_s8  ;;  %536 = vrot.lane.b32.xlu0 %v527_v16, %s1627_s8  ;;  %v1767_v18 = vsel %vm526_vm2, %v524_v12, %v520_v17  ;;  %1102 = vst [vmem:[#allocation1] ss:$4 sm:$0xff] %v503_v2  ;;  %v601_v21 = vsel %vm549_vm3, %v527_v16, 0  ;;  %v605_v41 = vsel %vm549_vm3, %v1764_v15, 0  ;;  %v1506_v17 = vld [vmem:[%s1940_s3 + $0x10] sm:$0xf] }
  0x43   : > { %650 = vrot.lane.b32.xlu2 %v1767_v18, %s1628_s0  ;;  %614 = vmatpush.bf16.msra.mxu3 %v601_v21  ;;  %v603_v38 = vsel %vm549_vm3, %v1767_v18, 0 }
  0x46   : > { %1495 = vmatmul.msk.bf16.vlgmr.msra.gmra.mxu3 %vm545_vm4, %v1793_v22 }
  0x49   : > { %v1105_v19 = vld.sshfl [vmem:[#allocation1 + $0x8] sm:$0xff pattern:$0x73625140]  ;;  %v1103_v20 = vld.sshfl [vmem:[#allocation1] sm:$0xff pattern:$0x73625140] }
  0x4a   : > { %538 = vrot.lane.b32.xlu0 %v1767_v18, %s1627_s8  ;;  %648 = vrot.lane.b32.xlu1 %v527_v16, %s1628_s0  ;;  %v1107_v23 = vld.sshfl [vmem:[#allocation1 + $0x10] sm:$0xff pattern:$0x73625140] }
  0x4b   : > { %652 = vrot.lane.b32.xlu2 %v1764_v15, %s1628_s0 }
  0x52   : > { %715 = vrot.lane.b32.xlu1 %v1767_v18, %s1629_s30  ;;  %713 = vrot.lane.b32.xlu0 %v527_v16, %s1629_s30 }
  0x53   : > { %717 = vrot.lane.b32.xlu2 %v1764_v15, %s1629_s30 }
  0x5a   : > { %780 = vrot.lane.b32.xlu1 %v1767_v18, %s1630_s17  ;;  %778 = vrot.lane.b32.xlu0 %v527_v16, %s1630_s17 }
  0x5b   : > { %782 = vrot.lane.b32.xlu2 %v1764_v15, %s1630_s17 }
  0x62   : > { %845 = vrot.lane.b32.xlu1 %v1767_v18, %s1631_s19  ;;  %843 = vrot.lane.b32.xlu0 %v527_v16, %s1631_s19 }
  0x63   : > { %847 = vrot.lane.b32.xlu2 %v1764_v15, %s1631_s19 }
  0x6a   : > { %910 = vrot.lane.b32.xlu1 %v1767_v18, %s1632_s27  ;;  %908 = vrot.lane.b32.xlu0 %v527_v16, %s1632_s27 }
  0x6b   : > { %912 = vrot.lane.b32.xlu2 %v1764_v15, %s1632_s27  ;;  %s1962_s27 = sld [smem:[#allocation8_spill]] }
  0x72   : > { %975 = vrot.lane.b32.xlu1 %v1767_v18, %s1633_s28  ;;  %973 = vrot.lane.b32.xlu0 %v527_v16, %s1633_s28 }
  0x73   : > { %977 = vrot.lane.b32.xlu2 %v1764_v15, %s1633_s28 }
  0x7a   : > { %1040 = vrot.lane.b32.xlu1 %v1767_v18, %s1634_s20  ;;  %1038 = vrot.lane.b32.xlu0 %v527_v16, %s1634_s20 }
  0x7b   : > { %1042 = vrot.lane.b32.xlu2 %v1764_v15, %s1634_s20 }
  0x82   : > { %1111 = vrot.lane.b32.xlu1 %v1105_v19, %s1630_s17  ;;  %1109 = vrot.lane.b32.xlu0 %v1103_v20, %s1630_s17  ;;  %v1514_v20 = vld [vmem:[%s1940_s3 + $0x18] sm:$0xf] }
  0x83   : > { %1113 = vrot.lane.b32.xlu2 %v1107_v23, %s1630_s17 }
  0x9d   : > { %v651_v24 = vpop.permute.xlu2 %650 }
  0xa5   : > { %v653_v25 = vpop.permute.xlu2 %652 }
  0xa6   : > { %v656_v26 = vsel %vm654_vm5, %v651_v24, %v653_v25  ;;  %v667_v46 = vsel %vm549_vm3, %v653_v25, 0 }
  0xa7   : > { %v664_v27 = vsel %vm549_vm3, %v656_v26, 0 }
  0xa8   : > { %689 = vmatpush.bf16.msrb.mxu3 %v664_v27 }
  0xab   : > { %1500 = vmatmul.msk.bf16.vlgmr.msrb.gmra.mxu3 %vm545_vm4, %v1803_v28 }
  0xad   : > { %v718_v29 = vpop.permute.xlu2 %717 }
  0xae   : > { %v732_v30 = vsel %vm549_vm3, %v718_v29, 0 }
  0xaf   : > { %767 = vmatpush.bf16.msra.mxu3 %v732_v30 }
  0xb4   : > { %v541_v31 = vpop.permute.xlu1 %540  ;;  %v537_v32 = vpop.permute.xlu0 %536 }
  0xb5   : > { %v557_v33 = vsel %vm549_vm3, %v541_v31, 0  ;;  %v783_v47 = vpop.permute.xlu2 %782 }
  0xb6   : > { %592 = vmatpush.bf16.msra.mxu2 %v557_v33  ;;  %v797_v54 = vsel %vm549_vm3, %v783_v47, 0 }
  0xb9   : > { %1494 = vmatmul.msk.bf16.vlgmr.msra.gmra.mxu2 %vm545_vm4, %v1491_v34 }
  0xbb   : > { %1505 = vmatmul.msk.bf16.vlgmr.msra.gmra.mxu3 %vm545_vm4, %v1816_v35 }
  0xbc   : > { %v539_v36 = vpop.permute.xlu0 %538  ;;  %v649_v37 = vpop.permute.xlu1 %648 }
  0xbd   : > { %v543_v39 = vsel %vm542_vm6, %v537_v32, %v539_v36  ;;  %v544_v40 = vsel %vm542_vm6, %v539_v36, %v541_v31  ;;  %v655_v42 = vsel %vm654_vm5, %v649_v37, %v651_v24  ;;  %v848_v55 = vpop.permute.xlu2 %847  ;;  %v1101_v37 = vld [vmem:[%s1962_s27] sm:$0xf] }
  0xbe   : > { %v551_v43 = vsel %vm549_vm3, %v543_v39, 0  ;;  %v554_v44 = vsel %vm549_vm3, %v544_v40, 0  ;;  %v661_v45 = vsel %vm549_vm3, %v655_v42, 0  ;;  %v862_v14 = vsel %vm549_vm3, %v848_v55, 0  ;;  %v1522_v42 = vld [vmem:[%s1940_s3 + $0x20] sm:$0xf] }
  0xbf   : > { %566 = vmatpush.bf16.msra.mxu0 %v551_v43  ;;  %579 = vmatpush.bf16.msra.mxu1 %v554_v44 }
  0xc0   : > { %676 = vmatpush.bf16.msrb.mxu2 %v661_v45 }
  0xc2   : > { %1492 = vmatmul.msk.bf16.vlgmr.msra.gmra.mxu0 %vm545_vm4, %v1491_v34  ;;  %1493 = vmatmul.msk.bf16.vlgmr.msra.gmra.mxu1 %vm545_vm4, %v1491_v34 }
  0xc3   : > { %627 = vmatpush.bf16.msrb.mxu0 %v603_v38  ;;  %640 = vmatpush.bf16.msrb.mxu1 %v605_v41 }
  0xc4   : > { %v716_v48 = vpop.permute.xlu1 %715  ;;  %v714_v49 = vpop.permute.xlu0 %713 }
  0xc5   : > { %v721_v50 = vsel %vm719_vm7, %v716_v48, %v718_v29  ;;  %v720_v51 = vsel %vm719_vm7, %v714_v49, %v716_v48  ;;  %v913_v62 = vpop.permute.xlu2 %912  ;;  %v1518_v29 = vld [vmem:[%s1940_s3 + $0x1c] sm:$0xf] }
  0xc6   : > { %v729_v52 = vsel %vm549_vm3, %v721_v50, 0  ;;  %v726_v53 = vsel %vm549_vm3, %v720_v51, 0  ;;  %v927_v24 = vsel %vm549_vm3, %v913_v62, 0 }
  0xc7   : > { %702 = vmatpush.bf16.msra.mxu0 %v667_v46  ;;  %741 = vmatpush.bf16.msra.mxu1 %v726_v53 }
  0xc8   : > { %754 = vmatpush.bf16.msra.mxu2 %v729_v52 }
  0xc9   : > { %1499 = vmatmul.msk.bf16.vlgmr.msrb.gmra.mxu2 %vm545_vm4, %v1803_v28  ;;  %v616_v43 = vpop.f32.mrf.mxu3 }
  0xcc   : > { %832 = vmatpush.bf16.msrb.mxu2 %v797_v54  ;;  %v781_v56 = vpop.permute.xlu1 %780  ;;  %v779_v57 = vpop.permute.xlu0 %778 }
  0xcd   : > { %v786_v58 = vsel %vm784_vm8, %v781_v56, %v783_v47  ;;  %v785_v59 = vsel %vm784_vm8, %v779_v57, %v781_v56  ;;  %v978_v4 = vpop.permute.xlu2 %977 }
  0xce   : > { %v794_v60 = vsel %vm549_vm3, %v786_v58, 0  ;;  %v791_v61 = vsel %vm549_vm3, %v785_v59, 0  ;;  %v992_v10 = vsel %vm549_vm3, %v978_v4, 0 }
  0xd1   : > { %v618_v44 = vpop.f32.mrf.mxu3 }
  0xd2   : > { %1496 = vmatmul.msk.bf16.vlgmr.msrb.gmra.mxu0 %vm545_vm4, %v1793_v22  ;;  %1497 = vmatmul.msk.bf16.vlgmr.msrb.gmra.mxu1 %vm545_vm4, %v1793_v22  ;;  %v1169_v44 = vld [vmem:[%s1963_s24] sm:$0x7] }
  0xd3   : > { %806 = vmatpush.bf16.msrb.mxu0 %v791_v61  ;;  %819 = vmatpush.bf16.msrb.mxu1 %v794_v60 }
  0xd4   : > { %v846_v63 = vpop.permute.xlu1 %845  ;;  %v844_v0 = vpop.permute.xlu0 %843 }
  0xd5   : > { %v850_v1 = vsel %vm849_vm9, %v844_v0, %v846_v63  ;;  %v851_v7 = vsel %vm849_vm9, %v846_v63, %v848_v55  ;;  %v1043_v26 = vpop.permute.xlu2 %1042 }
  0xd6   : > { %v856_v2 = vsel %vm549_vm3, %v850_v1, 0  ;;  %v859_v13 = vsel %vm549_vm3, %v851_v7, 0  ;;  %v1057_v27 = vsel %vm549_vm3, %v1043_v26, 0 }
  0xd7   : > { %871 = vmatpush.bf16.msrb.mxu3 %v856_v2 }
  0xd9   : > { %1504 = vmatmul.msk.bf16.vlgmr.msra.gmra.mxu2 %vm545_vm4, %v1816_v35 }
  0xda   : > { %1511 = vmatmul.msk.bf16.vlgmr.msrb.gmra.mxu3 %vm545_vm4, %v1510_v3 }
  0xdc   : > { %v911_v5 = vpop.permute.xlu1 %910  ;;  %v909_v6 = vpop.permute.xlu0 %908 }
  0xdd   : > { %v915_v8 = vsel %vm914_vm10, %v909_v6, %v911_v5  ;;  %v916_v9 = vsel %vm914_vm10, %v911_v5, %v913_v62  ;;  %v1114_v38 = vpop.permute.xlu2 %1113 }
  0xde   : > { %v921_v11 = vsel %vm549_vm3, %v915_v8, 0  ;;  %v924_v12 = vsel %vm549_vm3, %v916_v9, 0  ;;  %v1128_v40 = vsel %vm522_vm1, %v1114_v38, 0 }
  0xdf   : > { %936 = vmatpush.bf16.msra.mxu2 %v921_v11  ;;  %949 = vmatpush.bf16.msra.mxu3 %v924_v12 }
  0xe2   : > { %1501 = vmatmul.msk.bf16.vlgmr.msra.gmra.mxu0 %vm545_vm4, %v1803_v28  ;;  %1503 = vmatmul.msk.bf16.vlgmr.msra.gmra.mxu1 %vm545_vm4, %v1816_v35 }
  0xe3   : > { %1027 = vmatpush.bf16.msrb.mxu3 %v992_v10  ;;  %884 = vmatpush.bf16.msra.mxu0 %v859_v13 }
  0xe4   : > { %897 = vmatpush.bf16.msra.mxu1 %v862_v14  ;;  %v976_v15 = vpop.permute.xlu1 %975  ;;  %v974_v19 = vpop.permute.xlu0 %973 }
  0xe5   : > { %v981_v16 = vsel %vm979_vm11, %v976_v15, %v978_v4  ;;  %v980_v21 = vsel %vm979_vm11, %v974_v19, %v976_v15 }
  0xe6   : > { %v989_v18 = vsel %vm549_vm3, %v981_v16, 0  ;;  %v986_v25 = vsel %vm549_vm3, %v980_v21, 0 }
  0xe9   : > { %1509 = vmatmul.msk.bf16.vlgmr.msrb.gmra.mxu2 %vm545_vm4, %v1506_v17 }
  0xea   : > { %1516 = vmatmul.msk.bf16.vlgmr.msra.gmra.mxu3 %vm545_vm4, %v1514_v20  ;;  %1014 = vmatpush.bf16.msrb.mxu2 %v989_v18 }
  0xec   : > { %v1041_v22 = vpop.permute.xlu1 %1040  ;;  %v1039_v23 = vpop.permute.xlu0 %1038 }
  0xed   : > { %v1046_v33 = vsel %vm1044_vm12, %v1041_v22, %v1043_v26  ;;  %v1045_v34 = vsel %vm1044_vm12, %v1039_v23, %v1041_v22 }
  0xee   : > { %v1054_v35 = vsel %vm549_vm3, %v1046_v33, 0  ;;  %v1051_v36 = vsel %vm549_vm3, %v1045_v34, 0 }
  0xf2   : > { %1507 = vmatmul.msk.bf16.vlgmr.msrb.gmra.mxu0 %vm545_vm4, %v1506_v17  ;;  %1508 = vmatmul.msk.bf16.vlgmr.msrb.gmra.mxu1 %vm545_vm4, %v1506_v17 }
  0xf3   : > { %962 = vmatpush.bf16.msrb.mxu0 %v927_v24  ;;  %1001 = vmatpush.bf16.msrb.mxu1 %v986_v25 }
  0xf4   : > { %v1112_v28 = vpop.permute.xlu1 %1111  ;;  %v1110_v30 = vpop.permute.xlu0 %1109 }
  0xf5   : > { %v1115_v31 = vsel %vm784_vm8, %v1110_v30, %v1112_v28  ;;  %v1116_v39 = vsel %vm784_vm8, %v1112_v28, %v1114_v38 }
  0xf6   : > { %v1122_v32 = vsel %vm522_vm1, %v1115_v31, 0  ;;  %v1125_v41 = vsel %vm522_vm1, %v1116_v39, 0  ;;  %vm1198_vm1 = vcmask 15360  }
  0xf7   : > { %1137 = vmatpush.bf16.msra.mxu3 %v1122_v32 }
  0xf9   : > { %1515 = vmatmul.msk.bf16.vlgmr.msra.gmra.mxu2 %vm545_vm4, %v1514_v20 }
  0xfa   : > { %1521 = vmatmul.msk.bf16.vlgmr.msrb.gmra.mxu3 %vm545_vm4, %v1518_v29  ;;  %1092 = vmatpush.bf16.msra.mxu2 %v1057_v27 }
 0x102   : > { %1512 = vmatmul.msk.bf16.vlgmr.msra.gmra.mxu0 %vm545_vm4, %v1510_v3  ;;  %1513 = vmatmul.msk.bf16.vlgmr.msra.gmra.mxu1 %vm545_vm4, %v1510_v3 }
 0x103   : > { %1066 = vmatpush.bf16.msra.mxu0 %v1051_v36  ;;  %1079 = vmatpush.bf16.msra.mxu1 %v1054_v35 }
 0x109   : > { %1520 = vmatmul.msk.bf16.vlgmr.msrb.gmra.mxu2 %vm545_vm4, %v1518_v29 }
 0x10a   : > { %1526 = vmatmul.msk.bf16.vlgmr.msra.gmra.mxu3 %vm1117_vm13, %v1101_v37 }
 0x112   : > { %1517 = vmatmul.msk.bf16.vlgmr.msrb.gmra.mxu0 %vm545_vm4, %v1514_v20  ;;  %1519 = vmatmul.msk.bf16.vlgmr.msrb.gmra.mxu1 %vm545_vm4, %v1518_v29 }
 0x113   : > { %1150 = vmatpush.bf16.msrb.mxu0 %v1125_v41  ;;  %1163 = vmatpush.bf16.msrb.mxu1 %v1128_v40 }
 0x119   : > { %1525 = vmatmul.msk.bf16.vlgmr.msra.gmra.mxu2 %vm545_vm4, %v1522_v42 }
 0x122   : > { %1523 = vmatmul.msk.bf16.vlgmr.msra.gmra.mxu0 %vm545_vm4, %v1522_v42  ;;  %1524 = vmatmul.msk.bf16.vlgmr.msra.gmra.mxu1 %vm545_vm4, %v1522_v42 }
 0x12e   : > { %v691_v45 = vpop.f32.mrf.mxu3 }
 0x132   : > { %1527 = vmatmul.msk.bf16.vlgmr.msrb.gmra.mxu0 %vm1117_vm13, %v1101_v37  ;;  %1528 = vmatmul.msk.bf16.vlgmr.msrb.gmra.mxu1 %vm1117_vm13, %v1101_v37 }
 0x136   : > { %v693_v46 = vpop.f32.mrf.mxu3 }
 0x13c   : > { %v594_v47 = vpop.f32.mrf.mxu2 }
 0x13e   : > { %v769_v51 = vpop.f32.mrf.mxu3 }
 0x13f   : > { %v568_v48 = vpop.f32.mrf.mxu0  ;;  %v581_v49 = vpop.f32.mrf.mxu1 }
 0x140   : > { %v617_v50 = vadd.f32 %v616_v43, %v568_v48 }
 0x144   : > { %v596_v52 = vpop.f32.mrf.mxu2 }
 0x145   : > { %v1171_v52 = vperm.slane %v1169_v44, 0 }
 0x146   : > { %v771_v55 = vpop.f32.mrf.mxu3 }
 0x147   : > { %v570_v53 = vpop.f32.mrf.mxu0  ;;  %v583_v54 = vpop.f32.mrf.mxu1  ;;  %v1172_v55 = vperm.slane %v1169_v44, 1 }
 0x14c   : > { %v678_v56 = vpop.f32.mrf.mxu2 }
 0x14d   : > { %v708_v57 = vadd.f32 %v678_v56, %v617_v50 }
 0x14f   : > { %v629_v58 = vpop.f32.mrf.mxu0  ;;  %v642_v59 = vpop.f32.mrf.mxu1 }
 0x150   : > { %v630_v60 = vadd.f32 %v629_v58, %v581_v49  ;;  %v643_v3 = vadd.f32 %v642_v59, %v594_v47  ;;  %v1173_v47 = vperm.slane %v1169_v44, 2 }
 0x152   : > { %v709_v61 = vadd.f32 %v691_v45, %v630_v60 }
 0x154   : > { %v680_v62 = vpop.f32.mrf.mxu2 }
 0x157   : > { %v631_v63 = vpop.f32.mrf.mxu0  ;;  %v644_v0 = vpop.f32.mrf.mxu1 }
 0x15c   : > { %v756_v1 = vpop.f32.mrf.mxu2 }
 0x15d   : > { %v873_v2 = vpop.f32.mrf.mxu3  ;;  %v774_v33 = vadd.f32 %v756_v1, %v709_v61 }
 0x15f   : > { %v704_v4 = vpop.f32.mrf.mxu0  ;;  %v743_v5 = vpop.f32.mrf.mxu1 }
 0x160   : > { %v710_v6 = vadd.f32 %v704_v4, %v643_v3  ;;  %v773_v34 = vadd.f32 %v743_v5, %v708_v57 }
 0x162   : > { %v775_v7 = vadd.f32 %v769_v51, %v710_v6 }
 0x164   : > { %v758_v8 = vpop.f32.mrf.mxu2 }
 0x165   : > { %v875_v9 = vpop.f32.mrf.mxu3 }
 0x167   : > { %v706_v10 = vpop.f32.mrf.mxu0  ;;  %v745_v11 = vpop.f32.mrf.mxu1 }
 0x16c   : > { %v834_v12 = vpop.f32.mrf.mxu2 }
 0x16d   : > { %v951_v13 = vpop.f32.mrf.mxu3  ;;  %v840_v32 = vadd.f32 %v834_v12, %v775_v7 }
 0x16f   : > { %v808_v14 = vpop.f32.mrf.mxu0  ;;  %v821_v15 = vpop.f32.mrf.mxu1 }
 0x170   : > { %v838_v38 = vadd.f32 %v808_v14, %v773_v34  ;;  %v839_v39 = vadd.f32 %v821_v15, %v774_v33  ;;  %v1200_v34 = vld [vmem:[%s1740_s16] sm:$0xff] }
 0x172   : > { %v903_v45 = vadd.f32 %v873_v2, %v838_v38 }
 0x174   : > { %v836_v16 = vpop.f32.mrf.mxu2 }
 0x175   : > { %v953_v17 = vpop.f32.mrf.mxu3 }
 0x177   : > { %v810_v18 = vpop.f32.mrf.mxu0  ;;  %v823_v19 = vpop.f32.mrf.mxu1 }
 0x17c   : > { %v938_v20 = vpop.f32.mrf.mxu2 }
 0x17d   : > { %v1029_v21 = vpop.f32.mrf.mxu3  ;;  %v968_v48 = vadd.f32 %v938_v20, %v903_v45 }
 0x17f   : > { %v886_v22 = vpop.f32.mrf.mxu0  ;;  %v899_v23 = vpop.f32.mrf.mxu1 }
 0x180   : > { %v905_v36 = vadd.f32 %v899_v23, %v840_v32  ;;  %v904_v43 = vadd.f32 %v886_v22, %v839_v39 }
 0x182   : > { %v969_v49 = vadd.f32 %v951_v13, %v904_v43 }
 0x184   : > { %v940_v24 = vpop.f32.mrf.mxu2 }
 0x185   : > { %v1031_v25 = vpop.f32.mrf.mxu3 }
 0x187   : > { %v888_v26 = vpop.f32.mrf.mxu0  ;;  %v901_v27 = vpop.f32.mrf.mxu1 }
 0x18c   : > { %v1016_v28 = vpop.f32.mrf.mxu2 }
 0x18d   : > { %v1139_v29 = vpop.f32.mrf.mxu3  ;;  %v1034_v53 = vadd.f32 %v1016_v28, %v969_v49  ;;  %v1180_v28 = vld [vmem:[%s1732_s11] sm:$0xff] }
 0x18e   : > { %v1206_v19 = vmul.f32 %v1139_v29, %v1139_v29 }
 0x18f   : > { %v964_v30 = vpop.f32.mrf.mxu0  ;;  %v1003_v31 = vpop.f32.mrf.mxu1 }
 0x190   : > { %v970_v40 = vadd.f32 %v964_v30, %v905_v36  ;;  %v1033_v54 = vadd.f32 %v1003_v31, %v968_v48 }
 0x192   : > { %v1035_v46 = vadd.f32 %v1029_v21, %v970_v40 }
 0x194   : > { %v1018_v35 = vpop.f32.mrf.mxu2 }
 0x195   : > { %v1141_v37 = vpop.f32.mrf.mxu3 }
 0x197   : > { %v966_v41 = vpop.f32.mrf.mxu0  ;;  %v1005_v42 = vpop.f32.mrf.mxu1 }
 0x19c   : > { %v1094_v50 = vpop.f32.mrf.mxu2 }
 0x19d   : > { %v1100_v51 = vadd.f32 %v1094_v50, %v1035_v46 }
 0x19f   : > { %v1218_v56 = vpack.c.bf16 %v1100_v51, %v1100_v51  ;;  %v1068_v57 = vpop.f32.mrf.mxu0  ;;  %v1081_v58 = vpop.f32.mrf.mxu1  ;;  %v1179_v59 = vmul.f32 %v1173_v47, %v1100_v51 }
 0x1a0   : > { %v1098_v60 = vadd.f32 %v1068_v57, %v1033_v54  ;;  %v1099_v61 = vadd.f32 %v1081_v58, %v1034_v53 }
 0x1a1   : > { %1221 = vst.msk [vmem:[%s1751_s14 + $0x8] sm:$0xf] %vm1220_vm14, %v1218_v56  ;;  %v1189_v1 = vmul.f32 %v1179_v59, %v1100_v51  ;;  %v1183_v6 = vsel %vm1182_vm15, %v1179_v59, 0.0 }
 0x1a2   : > { %v1177_v62 = vmul.f32 %v1171_v52, %v1098_v60  ;;  %v1178_v63 = vmul.f32 %v1172_v55, %v1099_v61  ;;  %v1217_v0 = vpack.c.bf16 %v1099_v61, %v1098_v60 }
 0x1a3   : > { %v1191_v11 = vsel %vm1182_vm15, %v1189_v1, 0.0 }
 0x1a4   : > { %v1187_v2 = vmul.f32 %v1177_v62, %v1098_v60  ;;  %v1188_v3 = vmul.f32 %v1178_v63, %v1099_v61  ;;  %1219 = vst [vmem:[%s1751_s14] sm:$0xff] %v1217_v0  ;;  %v1181_v4 = vadd.f32 %v1178_v63, %v1177_v62  ;;  %v1096_v5 = vpop.f32.mrf.mxu2 }
 0x1a6   : > { %v1184_v7 = vadd.f32 %v1183_v6, %v1181_v4  ;;  %v1190_v8 = vadd.f32 %v1188_v3, %v1187_v2 }
 0x1a7   : > { %v1070_v9 = vpop.f32.mrf.mxu0  ;;  %v1083_v10 = vpop.f32.mrf.mxu1 }
 0x1a8   : > { %1185 = vadd.xlane.f32.xlu0 %v1184_v7  ;;  %v1192_v12 = vadd.f32 %v1191_v11, %v1190_v8 }
 0x1aa   : > { %1193 = vadd.xlane.f32.xlu1 %v1192_v12 }
 0x1af   : > { %v1152_v13 = vpop.f32.mrf.mxu0  ;;  %v1165_v14 = vpop.f32.mrf.mxu1 }
 0x1b0   : > { %v1222_v15 = vpack.c.bf16 %v1152_v13, %v1139_v29  ;;  %v1223_v16 = vpack.c.bf16 %v1165_v14, %v1165_v14  ;;  %v1201_v17 = vadd.f32 %v1152_v13, %v1139_v29  ;;  %v1202_v18 = vsel %vm1182_vm15, %v1165_v14, 0.0 }
 0x1b1   : > { %v1207_v20 = vmul.f32 %v1152_v13, %v1152_v13  ;;  %v1208_v22 = vmul.f32 %v1165_v14, %v1165_v14 }
 0x1b2   : > { %1224 = vst [vmem:[%s1756_s21] sm:$0xff] %v1222_v15  ;;  %v1203_v21 = vadd.f32 %v1202_v18, %v1201_v17 }
 0x1b3   : > { %1225 = vst.msk [vmem:[%s1756_s21 + $0x8] sm:$0xf] %vm1220_vm14, %v1223_v16  ;;  %v1209_v25 = vadd.f32 %v1207_v20, %v1206_v19  ;;  %v1210_v26 = vsel %vm1182_vm15, %v1208_v22, 0.0 }
 0x1b4   : > { %1204 = vadd.xlane.f32.xlu2 %v1203_v21 }
 0x1b5   : > { %v1211_v27 = vadd.f32 %v1210_v26, %v1209_v25 }
 0x1b7   : > { %v1154_v23 = vpop.f32.mrf.mxu0  ;;  %v1167_v24 = vpop.f32.mrf.mxu1 }
 0x1bc   : > { %1212 = vadd.xlane.f32.xlu2 %v1211_v27 }
 0x21b   : > { %v1186_v30 = vpop.xlane.xlu0 %1185 }
 0x21d   : > { %v1194_v29 = vpop.xlane.xlu1 %1193 }
 0x21e   : > { %v1196_v31 = vsel %vm1195_vm0, %v1186_v30, %v1194_v29 }
 0x21f   : > { %v1197_v32 = vadd.f32 %v1196_v31, %v1180_v28 }
 0x221   : > { %1199 = vst.msk [vmem:[%s1732_s11] sm:$0xff] %vm1198_vm1, %v1197_v32 }
 0x227   : > { %v1205_v33 = vpop.xlane.xlu2 %1204 }
 0x22f   : > { %v1213_v35 = vpop.xlane.xlu2 %1212 }
 0x230   : > { %v1214_v36 = vsel %vm1195_vm0, %v1205_v33, %v1213_v35 }
 0x231   : > { %v1215_v37 = vadd.f32 %v1214_v36, %v1200_v34 }
 0x233   : > { %1216 = vst.msk [vmem:[%s1740_s16] sm:$0xff] %vm1198_vm1, %v1215_v37 }
 0x234 PF: > { %s1964_s14 = sld [smem:[#allocation4_spill]] }
 0x235   : > { %s1965_s30 = sld [smem:[#allocation2_spill]] }
 0x236   : > { %s1966_s10 = sld [smem:[#allocation3_spill]] }
 0x237   : > { %s1967_s11 = sld [smem:[#allocation5_spill]] }
 0x238   : > { %s1968_s12 = sld [smem:[#allocation6_spill]] }
 0x23a   : > { %s20_s13 = sadd.s32 1, %s1964_s14  }
 0x23b   : > { %p17_p11 = scmp.ge.s32.totalorder %s20_s13, 34  }
 0x23d   :  { %19 = sbr.rel (!%p17_p11) target bundleno = 5 (0x5), region = 130 }

// kernel: res_two_layer_conv_block1.4
= control target key start
LH: loop header
LB: loop body
LE: loop exit
PB: predicated region body
PF: predicated region fallthrough
CT: control target
= control target key end

     0   :  { %s1733_s24 = smov 0   ;;  %s1735_s25 = smov 0   ;;  %s2042_s0 = inlined_call_operand.vmem [shape: bf16[2,16,8,324], index: 0, kind: input, shape index: {}, may-alias: {0,1,2}]   ;;  %s2043_s1 = inlined_call_operand.vmem [shape: bf16[2,16,8,324], index: 1, kind: input, shape index: {}, may-alias: {0,1,2}]   ;;  %s2044_s2 = inlined_call_operand.vmem [shape: bf16[2,16,8,324], index: 2, kind: input, shape index: {}, may-alias: {0,1,2}]   ;;  %s2045_s3 = inlined_call_operand.vmem [shape: f32[2,8,2], index: 3, kind: input, shape index: {}]   ;;  %s2046_s4 = inlined_call_operand.vmem [shape: bf16[9,8,24], index: 4, kind: input, shape index: {}]   ;;  %s2047_s5 = inlined_call_operand.vmem [shape: f32[1,324], index: 5, kind: input, shape index: {}]   ;;  %s2048_s6 = inlined_call_operand.vmem [shape: bf16[2,16,8,324], index: 6, kind: output, shape index: {0}]   ;;  %s2049_s7 = inlined_call_operand.vmem [shape: f32[2,8,2], index: 7, kind: output, shape index: {1}]  }
   0x1   :  { %2050 = sst [smem:[#allocation4_spill]] %s2042_s0  ;;  %s1737_s26 = smov 0  }
   0x2   :  { %s1739_s27 = smov 0   ;;  %s1741_s28 = smov 0  }
   0x3 LB: > { %s27_s29 = sadd.s32 1, %s1670_s26  ;;  %s30_s30 = sadd.s32 1, %s1674_s27  ;;  %s1678_s28 = sphi %s1741_s28, %s18_s28   ;;  %s1674_s27 = sphi %s1739_s27, %s2059_s27   ;;  %s1670_s26 = sphi %s1737_s26, %s2058_s26   ;;  %s1666_s25 = sphi %s1735_s25, %s2057_s25   ;;  %s1662_s24 = sphi %s1733_s24, %s2056_s24  }
   0x4   : > { %p28_p0 = scmp.ge.s32.totalorder %s27_s29, 16  ;;  %p1520_p1 = scmp.ge.s32.totalorder %s1678_s28, 1 }
   0x5   : > { %p325_p2 = scmp.lt.s32.totalorder %s1678_s28, 33 }
   0x6   : > { %s2061_s29 = smov (%p28_p0, %s27_s29), 0  ;;  %s2063_s30 = smov (!%p28_p0, %s30_s30), %s1674_s27 }
   0x7   : > { %2051 = sst [smem:[#allocation2_spill]] %s2061_s29  ;;  %p326_p3 = pnand %p1520_p1, %p325_p2 }
   0x8   : > { %p32_p4 = scmp.ge.s32.totalorder %s2063_s30, 2  ;;  %s1521_s8 = sadd.s32 (!%p326_p3), 4294967295, %s1662_s24 }
   0x9   : > { %329 = sbr.rel (%p326_p3) target bundleno = 914 (0x392), region = 44  ;;  %p400_p5 = scmp.lt.s32.totalorder (!%p326_p3), %s1666_s25, 1 }
   0xa   : > { %s2065_s30 = smov (%p32_p4, %s2063_s30), 0  ;;  %p398_p6 = scmp.gt.s32.totalorder (!%p326_p3), %s1521_s8, 0 }
   0xb   : > { %2052 = sst [smem:[#allocation3_spill]] %s2065_s30  ;;  %p1522_p7 = scmp.lt.s32.totalorder (!%p326_p3), %s1521_s8, 15 }
   0xc   : > { %p414_p8 = scmp.lt.s32.totalorder (!%p326_p3), %s1662_s24, 15  ;;  %s421_s12 = sadd.s32 (!%p326_p3), 1, %s1662_s24 }
   0xd   : > { %p422_p9 = scmp.lt.s32.totalorder (!%p326_p3), %s421_s12, 15  ;;  %s2053_s0 = sld [smem:[#allocation4_spill]] (!%p326_p3) }
   0xe   : > { %s2067_s25 = smov (!%p400_p5, %s1666_s25), 1  ;;  %s2069_s8 = smov (!%p398_p6, %s1521_s8), 0 }
   0xf   : > { %s1579_s9 = smul.u32 48, %s2067_s25  ;;  %s2071_s8 = smov (!%p1522_p7, %s2069_s8), 15 }
  0x10   : > { %s415_s10 = scalar_select %p414_p8, %s1662_s24, 15 }
  0x11   : > { %s1578_s11 = smul.u32 3, %s2071_s8  ;;  %s1533_s15 = sshll.u32 %s2067_s25, 3 }
  0x12   : > { %s1580_s13 = smul.u32 3, %s415_s10  ;;  %s439_s10 = scalar_lea.vmem %s2045_s3, %s1533_s15 }
  0x13   : > { %s406_s14 = sadd.s32 %s1579_s9, %s1578_s11  ;;  %s2073_s12 = smov (!%p422_p9, %s421_s12), 15 }
  0x14   : > { %s1527_s16 = sshll.u32 %s406_s14, 2  ;;  %s418_s17 = sadd.s32 %s1580_s13, %s1579_s9 }
  0x15   : > { %s1774_s20 = scalar_lea.vmem %s2053_s0, %s1527_s16  ;;  %s1528_s21 = sshll.u32 %s418_s17, 2 }
  0x16   : > { %s1779_s30 = scalar_lea.vmem %s2043_s1, %s1528_s21  ;;  %s1787_s13 = scalar_lea.vmem %s2048_s6, %s1528_s21 }
  0x17   : > { %s1792_s16 = scalar_lea.vmem %s2049_s7, %s1533_s15  ;;  %s2075_s12 = smov (!%p422_p9, %s2073_s12), 15 }
  0x18   : > { %s1581_s17 = smul.u32 3, %s2075_s12  ;;  %p1536_p10 = scmp.ne.s32.totalorder %s1662_s24, 0 }
  0x1a   : > { %s430_s19 = sadd.s32 %s1581_s17, %s1579_s9  ;;  %457 = sbr.rel (%p1536_p10) target bundleno = 33 (0x21), region = 48 }
  0x1b   : > { %s1532_s22 = sshll.u32 %s430_s19, 2 }
  0x1c   : > { %s1797_s29 = scalar_lea.vmem %s2044_s2, %s1532_s22 }
  0x1f   : > { %vm458_vm0 = vcmask 15360   ;;  %v1680_v0 = vmov 0.0  }
  0x20   : > { %459 = vst.msk [vmem:[%s1792_s16] sm:$0xff] %vm458_vm0, %v1680_v0 }
  0x21 PF: > { %v460_v1 = vld [vmem:[%s439_s10] sm:$0xff]  ;;  %s1681_s15 = smov 1   ;;  %v1682_v4 = vmov 0   ;;  %v1683_v5 = vmov 1   ;;  %p480_p11 = scmp.gt.s32.totalorder %s1662_s24, 0  ;;  %vm602_vm4 = vcmask 1043456  }
  0x22   : > { %v461_v2 = vmul.f32 0.00024414063, %v460_v1  ;;  %1635 = vset.pattern.permute.xlu0 %v1682_v4  ;;  %1636 = vset.pattern.permute.xlu1 %v1683_v5  ;;  %s486_s0 = scalar_select %p414_p8, 1, 0  ;;  %v495_v16 = vld [vmem:[%s1797_s29 + $0x8] sm:$0xf]  ;;  %v494_v17 = vld [vmem:[%s1797_s29] sm:$0xff] }
  0x23   : > { %s481_s9 = scalar_select %p480_p11, 1, 0  ;;  %v490_v18 = vld [vmem:[%s1774_s20] sm:$0xff]  ;;  %v491_v22 = vld [vmem:[%s1774_s20 + $0x8] sm:$0xf]  ;;  %v556_v23 = vunpack.c.l.bf16 %v495_v16  ;;  %v554_v26 = vunpack.c.l.bf16 %v494_v17  ;;  %v555_v27 = vunpack.c.h.bf16 %v494_v17  ;;  %vm627_vm5 = vcmask 154624  }
  0x24   : > { %v462_v3 = vmul.f32 %v461_v2, %v461_v2  ;;  %s487_s12 = scvt.s32.f32 %s486_s0  ;;  %v1810_v19 = vld [vmem:[%s2047_s5] sm:$0x7]  ;;  %v496_v28 = vunpack.c.l.bf16 %v490_v18  ;;  %v497_v29 = vunpack.c.h.bf16 %v490_v18  ;;  %v493_v30 = vld [vmem:[%s1779_s30 + $0x8] sm:$0xf]  ;;  %v498_v34 = vunpack.c.l.bf16 %v491_v22  ;;  %s1684_s24 = smov 19   ;;  %vm1541_vm7 = vmneg %vm627_vm5 }
  0x25   : > { %s482_s21 = scvt.s32.f32 %s481_s9  ;;  %v492_v21 = vld [vmem:[%s1779_s30] sm:$0xff]  ;;  %v532_v37 = vunpack.c.l.bf16 %v493_v30  ;;  %v543_v51 = vperm.slane %v1810_v19, 0  ;;  %v544_v52 = vperm.slane %v1810_v19, 1  ;;  %v545_v18 = vperm.slane %v1810_v19, 2  ;;  %s1685_s30 = smov 126  }
  0x26   : > { %464 = vrot.lane.b32.xlu0 %v462_v3, %s1681_s15  ;;  %v488_v20 = vstv %s487_s12  ;;  %v530_v32 = vunpack.c.l.bf16 %v492_v21  ;;  %v531_v33 = vunpack.c.h.bf16 %v492_v21  ;;  %s1686_s20 = smov 127   ;;  %vm640_vm6 = vcmask 711680   ;;  %s1687_s11 = smov 110  }
  0x27   : > { %v483_v24 = vstv %s482_s21  ;;  %v489_v31 = vmul.f32 %v488_v20, %v1810_v19  ;;  %s1688_s25 = smov 109   ;;  %s1689_s14 = smov 108   ;;  %vm673_vm8 = vcmask 195584   ;;  %vm788_vm9 = vcmask 1031168  }
  0x28   : > { %v484_v35 = vmul.f32 %v483_v24, %v1810_v19  ;;  %s1690_s18 = smov 92   ;;  %s1691_s17 = smov 91   ;;  %vm665_vm10 = vcmask 1039360   ;;  %vm864_vm11 = vcmask 900096   ;;  %vm1016_vm12 = vcmask 883712  }
  0x29   : > { %v569_v42 = vperm.slane %v489_v31, 2  ;;  %v567_v46 = vperm.slane %v489_v31, 0  ;;  %v568_v47 = vperm.slane %v489_v31, 1  ;;  %s1692_s23 = smov 90   ;;  %vm940_vm13 = vcmask 891904  }
  0x2a   : > { %v519_v48 = vperm.slane %v484_v35, 0  ;;  %v520_v49 = vperm.slane %v484_v35, 1  ;;  %v521_v53 = vperm.slane %v484_v35, 2  ;;  %vm1092_vm14 = vcmask 752640  }
  0x2b   : > { %vm1168_vm15 = vcmask 744448   ;;  %vm1244_vm0 = vcmask 736256  }
  0x2e   : > { %501 = vperm.xlu0 %1635, %v461_v2  }
  0x36   : > { %1637 = vset.pattern.permute.xlu0 %v1683_v5 }
  0x98   : > { %v465_v6 = vpop.permute.xlu0 %464 }
  0x99   : > { %v467_v7 = vsub.f32 %v461_v2, %v465_v6 }
  0x9b   : > { %v468_v8 = vadd.f32 1e-05, %v467_v7 }
  0x9d   : > { %1638 = vrsqrt.f32 %v468_v8  ;;  %vm475_vm2 = vweird.f32 %v468_v8 }
  0xa0   : > { %v502_v25 = vpop.permute.xlu0 %501 }
  0xa1   : > { %v559_v36 = vsub.f32 %v556_v23, %v502_v25  ;;  %v557_v38 = vsub.f32 %v554_v26, %v502_v25  ;;  %v558_v39 = vsub.f32 %v555_v27, %v502_v25  ;;  %v504_v40 = vsub.f32 %v496_v28, %v502_v25 }
  0xa2   : > { %v505_v41 = vsub.f32 %v497_v29, %v502_v25  ;;  %v533_v43 = vsub.f32 %v530_v32, %v502_v25  ;;  %v534_v44 = vsub.f32 %v531_v33, %v502_v25  ;;  %v506_v45 = vsub.f32 %v498_v34, %v502_v25 }
  0xa3   : > { %v1639_v9 = vpop.eup %1638  ;;  %v535_v54 = vsub.f32 %v532_v37, %v502_v25 }
  0xa4   : > { %v470_v10 = vmul.f32 %v1639_v9, %v468_v8  ;;  %vm476_vm1 = vweird.f32 %v1639_v9 }
  0xa5   : > { %vm477_vm3 = vmor %vm475_vm2, %vm476_vm1  ;;  %vm1332_vm1 = vcmask 551936   ;;  %vm1311_vm2 = vcmask 556032  }
  0xa6   : > { %v471_v11 = vmul.f32 %v1639_v9, %v470_v10 }
  0xa8   : > { %v472_v12 = vmul.f32 0.5, %v471_v11 }
  0xaa   : > { %v473_v13 = vsub.f32 1.5, %v472_v12 }
  0xac   : > { %v474_v14 = vmul.f32 %v1639_v9, %v473_v13 }
  0xae   : > { %v478_v15 = vsel %vm477_vm3, %v1639_v9, %v474_v14  ;;  %vm1324_vm3 = vcmask 7168  }
  0xaf   : > { %509 = vperm.xlu1 %1636, %v478_v15  }
 0x121   : > { %v510_v50 = vpop.permute.xlu1 %509 }
 0x122   : > { %v562_v55 = vmul.f32 %v559_v36, %v510_v50  ;;  %v560_v56 = vmul.f32 %v557_v38, %v510_v50  ;;  %v561_v57 = vmul.f32 %v558_v39, %v510_v50  ;;  %v512_v58 = vmul.f32 %v510_v50, %v504_v40 }
 0x123   : > { %v513_v59 = vmul.f32 %v510_v50, %v505_v41  ;;  %v536_v60 = vmul.f32 %v533_v43, %v510_v50  ;;  %v537_v61 = vmul.f32 %v534_v44, %v510_v50  ;;  %v514_v62 = vmul.f32 %v510_v50, %v506_v45 }
 0x124   : > { %v565_v63 = vmax.f32 %v562_v55, 0.0  ;;  %v563_v0 = vmax.f32 %v560_v56, 0.0  ;;  %v564_v1 = vmax.f32 %v561_v57, 0.0  ;;  %v515_v2 = vmax.f32 %v512_v58, 0.0 }
 0x125   : > { %v516_v3 = vmax.f32 %v513_v59, 0.0  ;;  %v539_v4 = vmax.f32 %v536_v60, 0.0  ;;  %v540_v5 = vmax.f32 %v537_v61, 0.0  ;;  %v517_v6 = vmax.f32 %v514_v62, 0.0 }
 0x126   : > { %v575_v7 = vmul.f32 %v569_v42, %v565_v63  ;;  %v573_v8 = vmul.f32 %v567_v46, %v563_v0  ;;  %v574_v9 = vmul.f32 %v568_v47, %v564_v1  ;;  %v525_v10 = vmul.f32 %v519_v48, %v515_v2 }
 0x127   : > { %v526_v11 = vmul.f32 %v520_v49, %v516_v3  ;;  %v549_v12 = vmul.f32 %v543_v51, %v539_v4  ;;  %v550_v13 = vmul.f32 %v544_v52, %v540_v5  ;;  %v527_v14 = vmul.f32 %v521_v53, %v517_v6  ;;  %v1894_v3 = vld [vmem:[%s2046_s4] sm:$0xf] }
 0x128   : > { %v577_v15 = vpack.c.bf16 %v575_v7, %v575_v7  ;;  %v576_v16 = vpack.c.bf16 %v574_v9, %v573_v8  ;;  %v538_v17 = vmul.f32 %v535_v54, %v510_v50 }
 0x129   : > { %v528_v20 = vpack.c.bf16 %v526_v11, %v525_v10  ;;  %v552_v21 = vpack.c.bf16 %v550_v13, %v549_v12  ;;  %v529_v22 = vpack.c.bf16 %v527_v14, %v527_v14 }
 0x12a   : > { %v598_v23 = vunpack.c.l.b16 %v577_v15  ;;  %v597_v24 = vunpack.c.h.b16 %v576_v16  ;;  %v541_v25 = vmax.f32 %v538_v17, 0.0  ;;  %v596_v45 = vunpack.c.l.b16 %v576_v16 }
 0x12b   : > { %v580_v26 = vunpack.c.l.b16 %v528_v20  ;;  %v588_v27 = vunpack.c.l.b16 %v552_v21  ;;  %v582_v31 = vunpack.c.l.b16 %v529_v22  ;;  %v581_v34 = vunpack.c.h.b16 %v528_v20 }
 0x12c   : > { %v601_v28 = vpack.c.b16 %v598_v23, %v598_v23  ;;  %v600_v29 = vpack.c.b16 %v597_v24, %v597_v24  ;;  %v551_v30 = vmul.f32 %v545_v18, %v541_v25  ;;  %v589_v35 = vunpack.c.h.b16 %v552_v21 }
 0x12d   : > { %v583_v32 = vpack.c.b16 %v580_v26, %v580_v26  ;;  %v591_v33 = vpack.c.b16 %v588_v27, %v588_v27  ;;  %v585_v39 = vpack.c.b16 %v582_v31, %v582_v31  ;;  %v584_v40 = vpack.c.b16 %v581_v34, %v581_v34 }
 0x12e   : > { %625 = vrot.lane.b32.xlu2 %v601_v28, %s1684_s24  ;;  %623 = vrot.lane.b32.xlu1 %v600_v29, %s1684_s24  ;;  %v553_v36 = vpack.c.bf16 %v551_v30, %v551_v30  ;;  %v592_v41 = vpack.c.b16 %v589_v35, %v589_v35  ;;  %v599_v46 = vpack.c.b16 %v596_v45, %v596_v45  ;;  %v1537_v28 = vld [vmem:[%s2046_s4 + $0x4] sm:$0xf] }
 0x12f   : > { %v605_v37 = vsel %vm602_vm4, %v583_v32, %v591_v33  ;;  %v1546_v32 = vld [vmem:[%s2046_s4 + $0x8] sm:$0xf] }
 0x130   : > { %615 = vrot.lane.b32.xlu0 %v605_v37, %s1684_s24  ;;  %v590_v38 = vunpack.c.l.b16 %v553_v36  ;;  %v608_v44 = vsel %vm602_vm4, %v584_v40, %v592_v41 }
 0x132   : > { %v593_v42 = vpack.c.b16 %v590_v38, %v590_v38 }
 0x134   : > { %v611_v43 = vsel %vm602_vm4, %v585_v39, %v593_v42 }
 0x136   : > { %619 = vrot.lane.b32.xlu1 %v611_v43, %s1684_s24  ;;  %617 = vrot.lane.b32.xlu2 %v608_v44, %s1684_s24 }
 0x13e   : > { %621 = vrot.lane.b32.xlu2 %v599_v46, %s1684_s24 }
 0x188   : > { %v626_v47 = vpop.permute.xlu2 %625 }
 0x190   : > { %v618_v48 = vpop.permute.xlu2 %617 }
 0x198   : > { %v622_v49 = vpop.permute.xlu2 %621 }
 0x199   : > { %v1830_v50 = vsel %vm627_vm5, 0, %v622_v49 }
 0x19a   : > { %782 = vrot.lane.b32.xlu1 %v1830_v50, %s1685_s30  ;;  %659 = vrot.lane.b32.xlu2 %v1830_v50, %s1686_s20  ;;  %v728_v53 = vsel %vm602_vm4, %v1830_v50, 0 }
 0x19b   : > { %741 = vmatpush.bf16.msra.mxu3 %v728_v53 }
 0x1a0   : > { %v624_v54 = vpop.permute.xlu1 %623 }
 0x1a1   : > { %v1839_v55 = vsel %vm627_vm5, %v622_v49, %v624_v54  ;;  %v631_v56 = vsel %vm627_vm5, %v624_v54, %v626_v47 }
 0x1a2   : > { %v1843_v57 = vsel %vm640_vm6, %v631_v56, 0  ;;  %v616_v58 = vpop.permute.xlu0 %615  ;;  %784 = vrot.lane.b32.xlu2 %v1839_v55, %s1685_s30  ;;  %661 = vrot.lane.b32.xlu0 %v1839_v55, %s1686_s20  ;;  %v731_v29 = vsel %vm602_vm4, %v1839_v55, 0 }
 0x1a3   : > { %1542 = vmatpush.bf16.msk.msra.mxu3 %vm1541_vm7, %v616_v58  ;;  %663 = vrot.lane.b32.xlu1 %v1843_v57, %s1686_s20  ;;  %v636_v59 = vsel %vm627_vm5, 0, %v616_v58  ;;  %v1851_v60 = vsel %vm627_vm5, %v616_v58, %v618_v48  ;;  %v733_v31 = vsel %vm602_vm4, %v1843_v57, 0 }
 0x1a6   : > { %1543 = vmatmul.msk.bf16.vlgmr.msra.gmra.mxu3 %vm673_vm8, %v1894_v3 }
 0x1a8   : > { %v620_v61 = vpop.permute.xlu1 %619 }
 0x1a9   : > { %v629_v62 = vsel %vm627_vm5, %v618_v48, %v620_v61  ;;  %v1550_v61 = vld [vmem:[%s2046_s4 + $0xc] sm:$0xf] }
 0x1aa   : > { %860 = vrot.lane.b32.xlu0 %v1839_v55, %s1687_s11  ;;  %653 = vrot.lane.b32.xlu2 %v636_v59, %s1686_s20  ;;  %v1858_v63 = vsel %vm640_vm6, %v629_v62, 0 }
 0x1ab   : > { %778 = vrot.lane.b32.xlu1 %v1851_v60, %s1685_s30 }
 0x1b2   : > { %786 = vrot.lane.b32.xlu2 %v1843_v57, %s1685_s30  ;;  %655 = vrot.lane.b32.xlu0 %v1851_v60, %s1686_s20 }
 0x1b3   : > { %657 = vrot.lane.b32.xlu1 %v1858_v63, %s1686_s20 }
 0x1ba   : > { %858 = vrot.lane.b32.xlu2 %v1830_v50, %s1687_s11  ;;  %776 = vrot.lane.b32.xlu0 %v636_v59, %s1685_s30 }
 0x1bb   : > { %862 = vrot.lane.b32.xlu1 %v1843_v57, %s1687_s11 }
 0x1c2   : > { %934 = vrot.lane.b32.xlu2 %v1830_v50, %s1688_s25  ;;  %854 = vrot.lane.b32.xlu0 %v1851_v60, %s1687_s11 }
 0x1c3   : > { %938 = vrot.lane.b32.xlu1 %v1843_v57, %s1688_s25 }
 0x1ca   : > { %780 = vrot.lane.b32.xlu2 %v1858_v63, %s1685_s30  ;;  %852 = vrot.lane.b32.xlu0 %v636_v59, %s1687_s11 }
 0x1cb   : > { %1010 = vrot.lane.b32.xlu1 %v1830_v50, %s1689_s14 }
 0x1d2   : > { %928 = vrot.lane.b32.xlu2 %v636_v59, %s1688_s25  ;;  %936 = vrot.lane.b32.xlu0 %v1839_v55, %s1688_s25 }
 0x1d3   : > { %856 = vrot.lane.b32.xlu1 %v1858_v63, %s1687_s11 }
 0x1da   : > { %1012 = vrot.lane.b32.xlu2 %v1839_v55, %s1689_s14  ;;  %930 = vrot.lane.b32.xlu0 %v1851_v60, %s1688_s25 }
 0x1db   : > { %1088 = vrot.lane.b32.xlu1 %v1839_v55, %s1690_s18 }
 0x1e2   : > { %1004 = vrot.lane.b32.xlu2 %v636_v59, %s1689_s14  ;;  %1086 = vrot.lane.b32.xlu0 %v1830_v50, %s1690_s18 }
 0x1e3   : > { %932 = vrot.lane.b32.xlu1 %v1858_v63, %s1688_s25 }
 0x1ea   : > { %1080 = vrot.lane.b32.xlu2 %v636_v59, %s1690_s18  ;;  %1006 = vrot.lane.b32.xlu0 %v1851_v60, %s1689_s14 }
 0x1eb   : > { %1014 = vrot.lane.b32.xlu1 %v1843_v57, %s1689_s14 }
 0x1f2   : > { %1090 = vrot.lane.b32.xlu2 %v1843_v57, %s1690_s18  ;;  %1082 = vrot.lane.b32.xlu0 %v1851_v60, %s1690_s18 }
 0x1f3   : > { %1008 = vrot.lane.b32.xlu1 %v1858_v63, %s1689_s14 }
 0x1f4   : > { %v660_v0 = vpop.permute.xlu2 %659 }
 0x1fa   : > { %1084 = vrot.lane.b32.xlu2 %v1858_v63, %s1690_s18  ;;  %1164 = vrot.lane.b32.xlu0 %v1839_v55, %s1691_s17 }
 0x1fb   : > { %1166 = vrot.lane.b32.xlu1 %v1843_v57, %s1691_s17 }
 0x1fc   : > { %v785_v1 = vpop.permute.xlu2 %784 }
 0x202   : > { %1162 = vrot.lane.b32.xlu2 %v1830_v50, %s1691_s17  ;;  %1158 = vrot.lane.b32.xlu0 %v1851_v60, %s1691_s17 }
 0x203   : > { %1160 = vrot.lane.b32.xlu1 %v1858_v63, %s1691_s17 }
 0x204   : > { %v654_v2 = vpop.permute.xlu2 %653 }
 0x20a   : > { %1238 = vrot.lane.b32.xlu2 %v1830_v50, %s1692_s23  ;;  %1156 = vrot.lane.b32.xlu0 %v636_v59, %s1691_s17 }
 0x20b   : > { %1242 = vrot.lane.b32.xlu1 %v1843_v57, %s1692_s23 }
 0x20c   : > { %v783_v4 = vpop.permute.xlu1 %782  ;;  %v787_v5 = vpop.permute.xlu2 %786 }
 0x20d   : > { %v792_v6 = vsel %vm788_vm9, %v785_v1, %v787_v5  ;;  %v791_v23 = vsel %vm788_vm9, %v783_v4, %v785_v1  ;;  %v806_v34 = vsel %vm602_vm4, %v787_v5, 0 }
 0x20e   : > { %v803_v7 = vsel %vm602_vm4, %v792_v6, 0  ;;  %v800_v30 = vsel %vm602_vm4, %v791_v23, 0 }
 0x20f   : > { %827 = vmatpush.bf16.msrb.mxu3 %v803_v7 }
 0x212   : > { %1232 = vrot.lane.b32.xlu2 %v636_v59, %s1692_s23  ;;  %1240 = vrot.lane.b32.xlu0 %v1839_v55, %s1692_s23 }
 0x213   : > { %1236 = vrot.lane.b32.xlu1 %v1858_v63, %s1692_s23 }
 0x214   : > { %v859_v8 = vpop.permute.xlu2 %858  ;;  %v662_v9 = vpop.permute.xlu0 %661 }
 0x215   : > { %v664_v10 = vpop.permute.xlu1 %663  ;;  %v668_v11 = vsel %vm665_vm10, %v660_v0, %v662_v9 }
 0x216   : > { %v678_v12 = vsel %vm602_vm4, %v668_v11, 0  ;;  %v684_v13 = vsel %vm602_vm4, %v664_v10, 0  ;;  %v669_v14 = vsel %vm665_vm10, %v662_v9, %v664_v10 }
 0x217   : > { %692 = vmatpush.bf16.msra.mxu0 %v678_v12  ;;  %718 = vmatpush.bf16.msra.mxu2 %v684_v13  ;;  %v681_v15 = vsel %vm602_vm4, %v669_v14, 0 }
 0x218   : > { %705 = vmatpush.bf16.msra.mxu1 %v681_v15 }
 0x21a   : > { %1234 = vrot.lane.b32.xlu0 %v1851_v60, %s1692_s23 }
 0x21c   : > { %v935_v16 = vpop.permute.xlu2 %934  ;;  %v861_v17 = vpop.permute.xlu0 %860 }
 0x21d   : > { %v779_v20 = vpop.permute.xlu1 %778  ;;  %v867_v33 = vsel %vm864_vm11, %v859_v8, %v861_v17  ;;  %v1554_v8 = vld [vmem:[%s2046_s4 + $0x10] sm:$0xf] }
 0x21e   : > { %v876_v36 = vsel %vm602_vm4, %v867_v33, 0 }
 0x224   : > { %v781_v21 = vpop.permute.xlu2 %780  ;;  %v656_v22 = vpop.permute.xlu0 %655 }
 0x225   : > { %v658_v24 = vpop.permute.xlu1 %657  ;;  %v666_v25 = vsel %vm665_vm10, %v654_v2, %v656_v22  ;;  %v790_v26 = vsel %vm788_vm9, %v779_v20, %v781_v21 }
 0x226   : > { %693 = vmatpush.bf16.msra.mxu0 %v666_v25  ;;  %719 = vmatpush.bf16.msra.mxu2 %v658_v24  ;;  %v667_v27 = vsel %vm665_vm10, %v656_v22, %v658_v24 }
 0x227   : > { %828 = vmatpush.bf16.msrb.mxu3 %v790_v26  ;;  %706 = vmatpush.bf16.msra.mxu1 %v667_v27 }
 0x229   : > { %1538 = vmatmul.msk.bf16.vlgmr.msra.gmra.mxu0 %vm673_vm8, %v1537_v28  ;;  %1540 = vmatmul.msk.bf16.vlgmr.msra.gmra.mxu2 %vm673_vm8, %v1537_v28 }
 0x22a   : > { %754 = vmatpush.bf16.msrb.mxu0 %v731_v29  ;;  %814 = vmatpush.bf16.msrb.mxu2 %v800_v30 }
 0x22b   : > { %767 = vmatpush.bf16.msrb.mxu1 %v733_v31  ;;  %1548 = vmatmul.msk.bf16.vlgmr.msrb.gmra.mxu3 %vm673_vm8, %v1546_v32 }
 0x22c   : > { %1539 = vmatmul.msk.bf16.vlgmr.msra.gmra.mxu1 %vm673_vm8, %v1537_v28  ;;  %v777_v35 = vpop.permute.xlu0 %776  ;;  %v929_v42 = vpop.permute.xlu2 %928  ;;  %v1562_v28 = vld [vmem:[%s2046_s4 + $0x18] sm:$0xf] }
 0x22d   : > { %v863_v37 = vpop.permute.xlu1 %862  ;;  %v789_v38 = vsel %vm788_vm9, %v777_v35, %v779_v20 }
 0x22e   : > { %755 = vmatpush.bf16.msrb.mxu0 %v1851_v60  ;;  %v868_v39 = vsel %vm864_vm11, %v861_v17, %v863_v37  ;;  %v882_v40 = vsel %vm602_vm4, %v863_v37, 0  ;;  %815 = vmatpush.bf16.msrb.mxu2 %v789_v38  ;;  %v1558_v17 = vld [vmem:[%s2046_s4 + $0x14] sm:$0xf] }
 0x22f   : > { %768 = vmatpush.bf16.msrb.mxu1 %v1858_v63  ;;  %v879_v41 = vsel %vm602_vm4, %v868_v39, 0  ;;  %916 = vmatpush.bf16.msra.mxu3 %v882_v40  ;;  %v1566_v40 = vld [vmem:[%s2046_s4 + $0x1c] sm:$0xf] }
 0x232   : > { %840 = vmatpush.bf16.msra.mxu0 %v806_v34  ;;  %903 = vmatpush.bf16.msra.mxu2 %v879_v41 }
 0x233   : > { %890 = vmatpush.bf16.msra.mxu1 %v876_v36 }
 0x234   : > { %v855_v43 = vpop.permute.xlu0 %854  ;;  %v1013_v45 = vpop.permute.xlu2 %1012 }
 0x235   : > { %v939_v44 = vpop.permute.xlu1 %938 }
 0x236   : > { %841 = vmatpush.bf16.msra.mxu0 %v781_v21  ;;  %v958_v62 = vsel %vm602_vm4, %v939_v44, 0 }
 0x239   : > { %1544 = vmatmul.msk.bf16.vlgmr.msrb.gmra.mxu0 %vm673_vm8, %v1894_v3  ;;  %1547 = vmatmul.msk.bf16.vlgmr.msrb.gmra.mxu2 %vm673_vm8, %v1546_v32 }
 0x23c   : > { %1545 = vmatmul.msk.bf16.vlgmr.msrb.gmra.mxu1 %vm673_vm8, %v1894_v3  ;;  %v853_v46 = vpop.permute.xlu0 %852  ;;  %v1005_v49 = vpop.permute.xlu2 %1004 }
 0x23d   : > { %v1011_v47 = vpop.permute.xlu1 %1010  ;;  %v865_v48 = vsel %vm864_vm11, %v853_v46, %v855_v43 }
 0x23e   : > { %891 = vmatpush.bf16.msra.mxu1 %v865_v48  ;;  %v1019_v50 = vsel %vm1016_vm12, %v1011_v47, %v1013_v45 }
 0x23f   : > { %v1028_v60 = vsel %vm602_vm4, %v1019_v50, 0 }
 0x244   : > { %v937_v53 = vpop.permute.xlu0 %936  ;;  %v1081_v2 = vpop.permute.xlu2 %1080 }
 0x245   : > { %v943_v54 = vsel %vm940_vm13, %v935_v16, %v937_v53  ;;  %v944_v55 = vsel %vm940_vm13, %v937_v53, %v939_v44  ;;  %v857_v56 = vpop.permute.xlu1 %856 }
 0x246   : > { %v952_v57 = vsel %vm602_vm4, %v943_v54, 0  ;;  %v955_v58 = vsel %vm602_vm4, %v944_v55, 0  ;;  %917 = vmatpush.bf16.msra.mxu3 %v857_v56  ;;  %v866_v59 = vsel %vm864_vm11, %v855_v43, %v857_v56  ;;  %v1570_v54 = vld [vmem:[%s2046_s4 + $0x20] sm:$0xf]  ;;  %v744_v55 = vpop.f32.mrf.mxu3 }
 0x247   : > { %904 = vmatpush.bf16.msra.mxu2 %v866_v59  ;;  %966 = vmatpush.bf16.msrb.mxu0 %v952_v57 }
 0x248   : > { %979 = vmatpush.bf16.msrb.mxu1 %v955_v58 }
 0x249   : > { %1549 = vmatmul.msk.bf16.vlgmr.msra.gmra.mxu0 %vm673_vm8, %v1546_v32  ;;  %1553 = vmatmul.msk.bf16.vlgmr.msra.gmra.mxu3 %vm673_vm8, %v1550_v61 }
 0x24a   : > { %1042 = vmatpush.bf16.msrb.mxu3 %v1028_v60  ;;  %1552 = vmatmul.msk.bf16.vlgmr.msra.gmra.mxu2 %vm673_vm8, %v1550_v61 }
 0x24b   : > { %992 = vmatpush.bf16.msrb.mxu2 %v958_v62 }
 0x24c   : > { %1551 = vmatmul.msk.bf16.vlgmr.msra.gmra.mxu1 %vm673_vm8, %v1550_v61  ;;  %v931_v63 = vpop.permute.xlu0 %930  ;;  %v1091_v9 = vpop.permute.xlu2 %1090 }
 0x24d   : > { %v1089_v0 = vpop.permute.xlu1 %1088  ;;  %v941_v1 = vsel %vm940_vm13, %v929_v42, %v931_v63  ;;  %v1110_v27 = vsel %vm602_vm4, %v1091_v9, 0 }
 0x24e   : > { %967 = vmatpush.bf16.msrb.mxu0 %v941_v1  ;;  %v1096_v10 = vsel %vm1092_vm14, %v1089_v0, %v1091_v9  ;;  %v746_v60 = vpop.f32.mrf.mxu3 }
 0x24f   : > { %v1107_v14 = vsel %vm602_vm4, %v1096_v10, 0 }
 0x254   : > { %v1087_v3 = vpop.permute.xlu0 %1086  ;;  %v1085_v21 = vpop.permute.xlu2 %1084 }
 0x255   : > { %v1095_v4 = vsel %vm1092_vm14, %v1087_v3, %v1089_v0  ;;  %v933_v5 = vpop.permute.xlu1 %932 }
 0x256   : > { %v1104_v6 = vsel %vm602_vm4, %v1095_v4, 0  ;;  %993 = vmatpush.bf16.msrb.mxu2 %v933_v5  ;;  %v942_v7 = vsel %vm940_vm13, %v931_v63, %v933_v5 }
 0x257   : > { %980 = vmatpush.bf16.msrb.mxu1 %v942_v7 }
 0x259   : > { %1555 = vmatmul.msk.bf16.vlgmr.msrb.gmra.mxu0 %vm673_vm8, %v1554_v8 }
 0x25a   : > { %1118 = vmatpush.bf16.msra.mxu2 %v1104_v6 }
 0x25b   : > { %1557 = vmatmul.msk.bf16.vlgmr.msrb.gmra.mxu2 %vm673_vm8, %v1554_v8 }
 0x25c   : > { %1556 = vmatmul.msk.bf16.vlgmr.msrb.gmra.mxu1 %vm673_vm8, %v1554_v8  ;;  %v1007_v11 = vpop.permute.xlu0 %1006  ;;  %v1163_v29 = vpop.permute.xlu2 %1162 }
 0x25d   : > { %v1015_v12 = vpop.permute.xlu1 %1014  ;;  %v1017_v13 = vsel %vm1016_vm12, %v1005_v49, %v1007_v11 }
 0x25e   : > { %v1020_v15 = vsel %vm1016_vm12, %v1013_v45, %v1015_v12  ;;  %v1034_v16 = vsel %vm602_vm4, %v1015_v12, 0  ;;  %1043 = vmatpush.bf16.msrb.mxu3 %v1017_v13 }
 0x25f   : > { %v1031_v20 = vsel %vm602_vm4, %v1020_v15, 0  ;;  %1068 = vmatpush.bf16.msra.mxu1 %v1034_v16 }
 0x260   : > { %1055 = vmatpush.bf16.msra.mxu0 %v1031_v20 }
 0x261   : > { %1559 = vmatmul.msk.bf16.vlgmr.msrb.gmra.mxu3 %vm673_vm8, %v1558_v17 }
 0x262   : > { %1131 = vmatpush.bf16.msra.mxu3 %v1107_v14 }
 0x264   : > { %v1083_v22 = vpop.permute.xlu0 %1082  ;;  %v1239_v45 = vpop.permute.xlu2 %1238 }
 0x265   : > { %v1009_v23 = vpop.permute.xlu1 %1008  ;;  %v1093_v24 = vsel %vm1092_vm14, %v1081_v2, %v1083_v22  ;;  %v1094_v25 = vsel %vm1092_vm14, %v1083_v22, %v1085_v21 }
 0x266   : > { %1069 = vmatpush.bf16.msra.mxu1 %v1009_v23  ;;  %1119 = vmatpush.bf16.msra.mxu2 %v1093_v24  ;;  %v1018_v26 = vsel %vm1016_vm12, %v1007_v11, %v1009_v23 }
 0x267   : > { %1132 = vmatpush.bf16.msra.mxu3 %v1094_v25  ;;  %1056 = vmatpush.bf16.msra.mxu0 %v1018_v26 }
 0x26a   : > { %1560 = vmatmul.msk.bf16.vlgmr.msra.gmra.mxu0 %vm673_vm8, %v1558_v17 }
 0x26b   : > { %1144 = vmatpush.bf16.msrb.mxu0 %v1110_v27  ;;  %1563 = vmatmul.msk.bf16.vlgmr.msra.gmra.mxu2 %vm673_vm8, %v1562_v28 }
 0x26c   : > { %1561 = vmatmul.msk.bf16.vlgmr.msra.gmra.mxu1 %vm673_vm8, %v1558_v17  ;;  %v1165_v30 = vpop.permute.xlu0 %1164  ;;  %v1233_v56 = vpop.permute.xlu2 %1232 }
 0x26d   : > { %v1171_v31 = vsel %vm1168_vm15, %v1163_v29, %v1165_v30  ;;  %v1167_v32 = vpop.permute.xlu1 %1166 }
 0x26e   : > { %v1180_v33 = vsel %vm602_vm4, %v1171_v31, 0  ;;  %v1172_v34 = vsel %vm1168_vm15, %v1165_v30, %v1167_v32  ;;  %v1186_v35 = vsel %vm602_vm4, %v1167_v32, 0 }
 0x26f   : > { %1145 = vmatpush.bf16.msrb.mxu0 %v1085_v21  ;;  %v1183_v36 = vsel %vm602_vm4, %v1172_v34, 0  ;;  %1194 = vmatpush.bf16.msrb.mxu1 %v1180_v33 }
 0x270   : > { %1220 = vmatpush.bf16.msrb.mxu3 %v1186_v35  ;;  %1207 = vmatpush.bf16.msrb.mxu2 %v1183_v36 }
 0x271   : > { %1564 = vmatmul.msk.bf16.vlgmr.msra.gmra.mxu3 %vm673_vm8, %v1562_v28 }
 0x274   : > { %v1159_v37 = vpop.permute.xlu0 %1158 }
 0x275   : > { %v1161_v38 = vpop.permute.xlu1 %1160 }
 0x276   : > { %1221 = vmatpush.bf16.msrb.mxu3 %v1161_v38  ;;  %v1170_v39 = vsel %vm1168_vm15, %v1159_v37, %v1161_v38 }
 0x277   : > { %1208 = vmatpush.bf16.msrb.mxu2 %v1170_v39 }
 0x27a   : > { %1565 = vmatmul.msk.bf16.vlgmr.msrb.gmra.mxu0 %vm673_vm8, %v1562_v28 }
 0x27b   : > { %1568 = vmatmul.msk.bf16.vlgmr.msrb.gmra.mxu2 %vm673_vm8, %v1566_v40 }
 0x27c   : > { %v1157_v41 = vpop.permute.xlu0 %1156 }
 0x27d   : > { %v1243_v42 = vpop.permute.xlu1 %1242  ;;  %v1169_v43 = vsel %vm1168_vm15, %v1157_v41, %v1159_v37 }
 0x27e   : > { %v1262_v44 = vsel %vm602_vm4, %v1243_v42, 0  ;;  %1195 = vmatpush.bf16.msrb.mxu1 %v1169_v43 }
 0x27f   : > { %1296 = vmatpush.bf16.msra.mxu2 %v1262_v44 }
 0x281   : > { %1567 = vmatmul.msk.bf16.vlgmr.msrb.gmra.mxu1 %vm673_vm8, %v1566_v40  ;;  %1569 = vmatmul.msk.bf16.vlgmr.msrb.gmra.mxu3 %vm673_vm8, %v1566_v40 }
 0x284   : > { %v1241_v46 = vpop.permute.xlu0 %1240 }
 0x285   : > { %v1247_v47 = vsel %vm1244_vm0, %v1239_v45, %v1241_v46  ;;  %v1248_v48 = vsel %vm1244_vm0, %v1241_v46, %v1243_v42  ;;  %v1237_v49 = vpop.permute.xlu1 %1236 }
 0x286   : > { %v1256_v50 = vsel %vm602_vm4, %v1247_v47, 0  ;;  %v1259_v53 = vsel %vm602_vm4, %v1248_v48, 0  ;;  %1297 = vmatpush.bf16.msra.mxu2 %v1237_v49  ;;  %vm1327_vm4 = vcmask 15360  }
 0x287   : > { %1270 = vmatpush.bf16.msra.mxu0 %v1256_v50  ;;  %1283 = vmatpush.bf16.msra.mxu1 %v1259_v53 }
 0x28b   : > { %1573 = vmatmul.msk.bf16.vlgmr.msra.gmra.mxu2 %vm673_vm8, %v1570_v54 }
 0x28c   : > { %v1235_v57 = vpop.permute.xlu0 %1234 }
 0x28d   : > { %v1245_v58 = vsel %vm1244_vm0, %v1233_v56, %v1235_v57  ;;  %v1246_v59 = vsel %vm1244_vm0, %v1235_v57, %v1237_v49 }
 0x28e   : > { %1271 = vmatpush.bf16.msra.mxu0 %v1245_v58  ;;  %1284 = vmatpush.bf16.msra.mxu1 %v1246_v59 }
 0x291   : > { %1571 = vmatmul.msk.bf16.vlgmr.msra.gmra.mxu0 %vm673_vm8, %v1570_v54  ;;  %1572 = vmatmul.msk.bf16.vlgmr.msra.gmra.mxu1 %vm673_vm8, %v1570_v54 }
 0x2a6   : > { %v695_v61 = vpop.f32.mrf.mxu0 }
 0x2a7   : > { %v745_v63 = vadd.f32 %v744_v55, %v695_v61 }
 0x2a9   : > { %v708_v62 = vpop.f32.mrf.mxu1 }
 0x2ac   : > { %v721_v0 = vpop.f32.mrf.mxu2 }
 0x2ae   : > { %v697_v1 = vpop.f32.mrf.mxu0  ;;  %v830_v2 = vpop.f32.mrf.mxu3 }
 0x2b1   : > { %v710_v3 = vpop.f32.mrf.mxu1 }
 0x2b4   : > { %v723_v4 = vpop.f32.mrf.mxu2 }
 0x2b6   : > { %v757_v5 = vpop.f32.mrf.mxu0  ;;  %v832_v6 = vpop.f32.mrf.mxu3 }
 0x2b7   : > { %v758_v7 = vadd.f32 %v757_v5, %v708_v62 }
 0x2b9   : > { %v770_v8 = vpop.f32.mrf.mxu1  ;;  %v848_v10 = vadd.f32 %v830_v2, %v758_v7 }
 0x2ba   : > { %v771_v9 = vadd.f32 %v770_v8, %v721_v0 }
 0x2bc   : > { %v817_v11 = vpop.f32.mrf.mxu2 }
 0x2bd   : > { %v847_v12 = vadd.f32 %v817_v11, %v745_v63 }
 0x2be   : > { %v759_v13 = vpop.f32.mrf.mxu0 }
 0x2c1   : > { %v772_v14 = vpop.f32.mrf.mxu1 }
 0x2c4   : > { %v819_v15 = vpop.f32.mrf.mxu2 }
 0x2c6   : > { %v843_v16 = vpop.f32.mrf.mxu0 }
 0x2c7   : > { %v849_v46 = vadd.f32 %v843_v16, %v771_v9 }
 0x2c9   : > { %v893_v17 = vpop.f32.mrf.mxu1 }
 0x2ca   : > { %v923_v48 = vadd.f32 %v893_v17, %v847_v12 }
 0x2cc   : > { %v919_v20 = vpop.f32.mrf.mxu3 }
 0x2cd   : > { %v906_v21 = vpop.f32.mrf.mxu2  ;;  %v925_v49 = vadd.f32 %v919_v20, %v849_v46 }
 0x2ce   : > { %v845_v22 = vpop.f32.mrf.mxu0  ;;  %v924_v50 = vadd.f32 %v906_v21, %v848_v10 }
 0x2d1   : > { %v895_v23 = vpop.f32.mrf.mxu1 }
 0x2d4   : > { %v921_v24 = vpop.f32.mrf.mxu3 }
 0x2d5   : > { %v908_v25 = vpop.f32.mrf.mxu2 }
 0x2d6   : > { %v969_v26 = vpop.f32.mrf.mxu0 }
 0x2d7   : > { %v999_v55 = vadd.f32 %v969_v26, %v923_v48 }
 0x2d9   : > { %v982_v27 = vpop.f32.mrf.mxu1 }
 0x2da   : > { %v1000_v57 = vadd.f32 %v982_v27, %v924_v50 }
 0x2de   : > { %v995_v28 = vpop.f32.mrf.mxu2  ;;  %v971_v29 = vpop.f32.mrf.mxu0 }
 0x2df   : > { %v1001_v56 = vadd.f32 %v995_v28, %v925_v49 }
 0x2e1   : > { %v984_v30 = vpop.f32.mrf.mxu1 }
 0x2e4   : > { %v1045_v31 = vpop.f32.mrf.mxu3 }
 0x2e5   : > { %v1075_v58 = vadd.f32 %v1045_v31, %v999_v55 }
 0x2e6   : > { %v997_v32 = vpop.f32.mrf.mxu2 }
 0x2e7   : > { %v1058_v33 = vpop.f32.mrf.mxu0 }
 0x2e8   : > { %v1076_v60 = vadd.f32 %v1058_v33, %v1000_v57 }
 0x2e9   : > { %v1071_v34 = vpop.f32.mrf.mxu1 }
 0x2ea   : > { %v1077_v59 = vadd.f32 %v1071_v34, %v1001_v56 }
 0x2ec   : > { %v1047_v35 = vpop.f32.mrf.mxu3 }
 0x2ee   : > { %v1121_v36 = vpop.f32.mrf.mxu2 }
 0x2ef   : > { %v1060_v37 = vpop.f32.mrf.mxu0  ;;  %v1151_v61 = vadd.f32 %v1121_v36, %v1075_v58 }
 0x2f1   : > { %v1073_v38 = vpop.f32.mrf.mxu1 }
 0x2f4   : > { %v1134_v39 = vpop.f32.mrf.mxu3 }
 0x2f5   : > { %v1152_v63 = vadd.f32 %v1134_v39, %v1076_v60 }
 0x2f6   : > { %v1123_v40 = vpop.f32.mrf.mxu2 }
 0x2f7   : > { %v1147_v41 = vpop.f32.mrf.mxu0 }
 0x2f8   : > { %v1153_v62 = vadd.f32 %v1147_v41, %v1077_v59 }
 0x2fc   : > { %v1136_v42 = vpop.f32.mrf.mxu3 }
 0x2fe   : > { %v1210_v43 = vpop.f32.mrf.mxu2  ;;  %v1197_v44 = vpop.f32.mrf.mxu1 }
 0x2ff   : > { %v1149_v45 = vpop.f32.mrf.mxu0  ;;  %v1227_v1 = vadd.f32 %v1197_v44, %v1151_v61  ;;  %v1228_v3 = vadd.f32 %v1210_v43, %v1152_v63 }
 0x304   : > { %v1223_v47 = vpop.f32.mrf.mxu3 }
 0x305   : > { %v1229_v2 = vadd.f32 %v1223_v47, %v1153_v62 }
 0x306   : > { %v1212_v53 = vpop.f32.mrf.mxu2  ;;  %v1199_v54 = vpop.f32.mrf.mxu1 }
 0x30c   : > { %v1225_v0 = vpop.f32.mrf.mxu3 }
 0x30e   : > { %v1299_v4 = vpop.f32.mrf.mxu2  ;;  %v1273_v5 = vpop.f32.mrf.mxu0 }
 0x30f   : > { %v1305_v6 = vadd.f32 %v1299_v4, %v1229_v2  ;;  %v1303_v7 = vadd.f32 %v1273_v5, %v1227_v1  ;;  %v1286_v8 = vpop.f32.mrf.mxu1 }
 0x310   : > { %v1304_v9 = vadd.f32 %v1286_v8, %v1228_v3 }
 0x311   : > { %v1330_v10 = vpack.c.bf16 %v1305_v6, %v1305_v6  ;;  %v1306_v11 = vmul.f32 %v1303_v7, %v543_v51  ;;  %v1308_v12 = vmul.f32 %v1305_v6, %v545_v18 }
 0x312   : > { %v1307_v13 = vmul.f32 %v1304_v9, %v544_v52  ;;  %v1329_v14 = vpack.c.bf16 %v1304_v9, %v1303_v7  ;;  %v1309_v52 = vld [vmem:[%s1792_s16] sm:$0xff] }
 0x313   : > { %1333 = vst.msk [vmem:[%s1787_s13 + $0x8] sm:$0xf] %vm1332_vm1, %v1330_v10  ;;  %v1316_v15 = vmul.f32 %v1306_v11, %v1303_v7  ;;  %v1318_v16 = vmul.f32 %v1308_v12, %v1305_v6  ;;  %v1312_v21 = vsel %vm1311_vm2, %v1308_v12, 0.0 }
 0x314   : > { %v1317_v17 = vmul.f32 %v1307_v13, %v1304_v9  ;;  %1331 = vst [vmem:[%s1787_s13] sm:$0xff] %v1329_v14  ;;  %v1310_v20 = vadd.f32 %v1307_v13, %v1306_v11 }
 0x315   : > { %v1320_v18 = vsel %vm1311_vm2, %v1318_v16, 0.0 }
 0x316   : > { %v1301_v22 = vpop.f32.mrf.mxu2  ;;  %v1275_v23 = vpop.f32.mrf.mxu0  ;;  %v1313_v51 = vadd.f32 %v1312_v21, %v1310_v20  ;;  %v1319_v24 = vadd.f32 %v1317_v17, %v1316_v15 }
 0x317   : > { %v1288_v25 = vpop.f32.mrf.mxu1 }
 0x318   : > { %1314 = vadd.xlane.f32.xlu1 %v1313_v51  ;;  %v1321_v19 = vadd.f32 %v1320_v18, %v1319_v24 }
 0x31a   : > { %1322 = vadd.xlane.f32.xlu2 %v1321_v19 }
 0x38b   : > { %v1315_v26 = vpop.xlane.xlu1 %1314 }
 0x38d   : > { %v1323_v27 = vpop.xlane.xlu2 %1322 }
 0x38e   : > { %v1325_v28 = vsel %vm1324_vm3, %v1315_v26, %v1323_v27 }
 0x38f   : > { %v1326_v29 = vadd.f32 %v1325_v28, %v1309_v52 }
 0x391   : > { %1328 = vst.msk [vmem:[%s1792_s16] sm:$0xff] %vm1327_vm4, %v1326_v29 }
 0x392 PF: > { %s18_s28 = sadd.s32 1, %s1678_s28   ;;  %s2054_s13 = sld [smem:[#allocation2_spill]] }
 0x393   : > { %p15_p12 = scmp.ge.s32.totalorder %s18_s28, 34   ;;  %s2055_s19 = sld [smem:[#allocation3_spill]] }
 0x394   : > { %s2056_s24 = smov %s1670_s26  ;;  %s2057_s25 = smov %s1674_s27 }
 0x395   :  { %17 = sbr.rel (!%p15_p12) target bundleno = 3 (0x3), region = 107 }
 0x398   : > { %s2058_s26 = smov %s2054_s13 }
 0x399   : > { %s2059_s27 = smov %s2055_s19 }

// kernel: res_two_layer_conv_block1.5
= control target key start
LH: loop header
LB: loop body
LE: loop exit
PB: predicated region body
PF: predicated region fallthrough
CT: control target
= control target key end

     0   :  { %s664_s15 = smov 0   ;;  %s666_s16 = smov 0   ;;  %s736_s0 = inlined_call_operand.vmem [shape: bf16[2,16,8,324], index: 0, kind: input, shape index: {}]   ;;  %s737_s1 = inlined_call_operand.vmem [shape: bf16[2,16,8,324], index: 1, kind: input, shape index: {}]   ;;  %s738_s2 = inlined_call_operand.vmem [shape: f32[2,8,2], index: 2, kind: input, shape index: {}]   ;;  %s739_s3 = inlined_call_operand.vmem [shape: f32[2,8,2], index: 3, kind: input, shape index: {}]   ;;  %s740_s4 = inlined_call_operand.vmem [shape: f32[2,16,8,324], index: 4, kind: output, shape index: {}]  }
   0x1   :  { %s668_s17 = smov 0   ;;  %s670_s18 = smov 0  }
   0x2   :  { %s672_s19 = smov 0  }
   0x3 LB: > { %s23_s20 = sadd.s32 1, %s626_s17  ;;  %s26_s21 = sadd.s32 1, %s630_s18  ;;  %s634_s19 = sphi %s672_s19, %s14_s19   ;;  %s630_s18 = sphi %s670_s18, %s744_s18   ;;  %s626_s17 = sphi %s668_s17, %s743_s17   ;;  %s622_s16 = sphi %s666_s16, %s742_s16   ;;  %s618_s15 = sphi %s664_s15, %s741_s15  }
   0x4   : > { %p24_p0 = scmp.ge.s32.totalorder %s23_s20, 16  ;;  %p536_p1 = scmp.ge.s32.totalorder %s634_s19, 1 }
   0x5   : > { %p216_p2 = scmp.lt.s32.totalorder %s634_s19, 33 }
   0x6   : > { %s746_s20 = smov (%p24_p0, %s23_s20), 0  ;;  %s748_s21 = smov (!%p24_p0, %s26_s21), %s630_s18 }
   0x7   : > { %p217_p3 = pnand %p536_p1, %p216_p2  ;;  %p28_p4 = scmp.ge.s32.totalorder %s748_s21, 2 }
   0x8   : > { %p267_p5 = scmp.lt.s32.totalorder (!%p217_p3), %s622_s16, 1  ;;  %s637_s29 = smov (!%p217_p3), 1  }
   0x9   : > { %s750_s21 = smov (%p28_p4, %s748_s21), 0  ;;  %220 = sbr.rel (%p217_p3) target bundleno = 267 (0x10b), region = 36 }
   0xa   : > { %p269_p6 = scmp.lt.s32.totalorder (!%p217_p3), %s618_s15, 15 }
   0xe   : > { %v636_v0 = vmov 0   ;;  %s752_s16 = smov (!%p267_p5, %s622_s16), 1  ;;  %v638_v7 = vmov 1   ;;  %s754_s15 = smov (!%p269_p6, %s618_s15), 15  ;;  %vm390_vm6 = vcmask 556032  }
   0xf   : > { %589 = vset.pattern.permute.xlu1 %v636_v0  ;;  %s539_s22 = sshll.u32 %s752_s16, 3  ;;  %590 = vset.pattern.permute.xlu2 %v638_v7  ;;  %s545_s30 = smul.u32 48, %s752_s16 }
  0x10   : > { %s288_s25 = scalar_lea.vmem %s738_s2, %s539_s22  ;;  %s292_s28 = scalar_lea.vmem %s739_s3, %s539_s22  ;;  %591 = vset.pattern.permute.xlu0 %v638_v7 }
  0x11   : > { %v302_v1 = vld [vmem:[%s288_s25] sm:$0xff]  ;;  %s544_s5 = smul.u32 3, %s754_s15 }
  0x12   : > { %v303_v2 = vmul.f32 0.00024414063, %v302_v1  ;;  %v321_v3 = vld [vmem:[%s292_s28] sm:$0xff] }
  0x13   : > { %v322_v5 = vmul.f32 0.00024414063, %v321_v3  ;;  %s708_s6 = sadd.s32 %s545_s30, %s544_s5 }
  0x14   : > { %v304_v4 = vmul.f32 %v303_v2, %v303_v2  ;;  %347 = vperm.xlu1 %589, %v303_v2   ;;  %s537_s7 = sshll.u32 %s708_s6, 2  ;;  %s541_s14 = sshll.u32 %s708_s6, 3 }
  0x15   : > { %v323_v6 = vmul.f32 %v322_v5, %v322_v5  ;;  %s275_s10 = scalar_lea.vmem %s736_s0, %s537_s7  ;;  %s284_s13 = scalar_lea.vmem %s737_s1, %s537_s7 }
  0x16   : > { %306 = vrot.lane.b32.xlu0 %v304_v4, %s637_s29  ;;  %v340_v29 = vld [vmem:[%s275_s10] sm:$0xff]  ;;  %v341_v30 = vld [vmem:[%s275_s10 + $0x8] sm:$0xf]  ;;  %s301_s22 = scalar_lea.vmem %s740_s4, %s541_s14 }
  0x17   : > { %v342_v31 = vunpack.c.l.bf16 %v340_v29  ;;  %v343_v32 = vunpack.c.h.bf16 %v340_v29  ;;  %v361_v33 = vld [vmem:[%s284_s13] sm:$0xff]  ;;  %v362_v34 = vld [vmem:[%s284_s13 + $0x8] sm:$0xf]  ;;  %v344_v36 = vunpack.c.l.bf16 %v341_v30 }
  0x18   : > { %v363_v37 = vunpack.c.l.bf16 %v361_v33  ;;  %v364_v38 = vunpack.c.h.bf16 %v361_v33  ;;  %v365_v39 = vunpack.c.l.bf16 %v362_v34 }
  0x1c   : > { %368 = vperm.xlu1 %589, %v322_v5  }
  0x1e   : > { %325 = vrot.lane.b32.xlu0 %v323_v6, %s637_s29 }
  0x86   : > { %v348_v28 = vpop.permute.xlu1 %347 }
  0x87   : > { %v350_v40 = vsub.f32 %v342_v31, %v348_v28  ;;  %v351_v41 = vsub.f32 %v343_v32, %v348_v28  ;;  %v352_v43 = vsub.f32 %v344_v36, %v348_v28 }
  0x88   : > { %v307_v8 = vpop.permute.xlu0 %306 }
  0x89   : > { %v309_v9 = vsub.f32 %v303_v2, %v307_v8 }
  0x8b   : > { %v310_v10 = vadd.f32 1e-05, %v309_v9 }
  0x8d   : > { %592 = vrsqrt.f32 %v310_v10  ;;  %vm317_vm1 = vweird.f32 %v310_v10 }
  0x8e   : > { %v369_v42 = vpop.permute.xlu1 %368 }
  0x8f   : > { %v371_v44 = vsub.f32 %v363_v37, %v369_v42  ;;  %v372_v45 = vsub.f32 %v364_v38, %v369_v42  ;;  %v373_v46 = vsub.f32 %v365_v39, %v369_v42 }
  0x90   : > { %v326_v11 = vpop.permute.xlu0 %325 }
  0x91   : > { %v328_v12 = vsub.f32 %v322_v5, %v326_v11 }
  0x93   : > { %v593_v13 = vpop.eup %592  ;;  %v329_v14 = vadd.f32 1e-05, %v328_v12 }
  0x94   : > { %v312_v15 = vmul.f32 %v593_v13, %v310_v10  ;;  %vm318_vm0 = vweird.f32 %v593_v13 }
  0x95   : > { %594 = vrsqrt.f32 %v329_v14  ;;  %vm319_vm2 = vmor %vm317_vm1, %vm318_vm0  ;;  %vm336_vm4 = vweird.f32 %v329_v14 }
  0x96   : > { %v313_v16 = vmul.f32 %v593_v13, %v312_v15 }
  0x98   : > { %v314_v17 = vmul.f32 0.5, %v313_v16 }
  0x9a   : > { %v315_v18 = vsub.f32 1.5, %v314_v17 }
  0x9b   : > { %v595_v19 = vpop.eup %594 }
  0x9c   : > { %v331_v20 = vmul.f32 %v595_v19, %v329_v14  ;;  %v316_v21 = vmul.f32 %v593_v13, %v315_v18  ;;  %vm337_vm3 = vweird.f32 %v595_v19 }
  0x9d   : > { %vm338_vm5 = vmor %vm336_vm4, %vm337_vm3 }
  0x9e   : > { %v332_v22 = vmul.f32 %v595_v19, %v331_v20  ;;  %v320_v23 = vsel %vm319_vm2, %v593_v13, %v316_v21 }
  0x9f   : > { %355 = vperm.xlu2 %590, %v320_v23  }
  0xa0   : > { %v333_v24 = vmul.f32 0.5, %v332_v22 }
  0xa2   : > { %v334_v25 = vsub.f32 1.5, %v333_v24 }
  0xa4   : > { %v335_v26 = vmul.f32 %v595_v19, %v334_v25 }
  0xa6   : > { %v339_v27 = vsel %vm338_vm5, %v595_v19, %v335_v26 }
  0xa7   : > { %376 = vperm.xlu2 %590, %v339_v27  }
  0xf9   : > { %v356_v35 = vpop.permute.xlu2 %355 }
  0xfa   : > { %v358_v47 = vmul.f32 %v356_v35, %v350_v40  ;;  %v359_v48 = vmul.f32 %v356_v35, %v351_v41  ;;  %v360_v50 = vmul.f32 %v356_v35, %v352_v43 }
 0x101   : > { %v377_v49 = vpop.permute.xlu2 %376 }
 0x102   : > { %v379_v51 = vmul.f32 %v377_v49, %v371_v44  ;;  %v380_v52 = vmul.f32 %v377_v49, %v372_v45  ;;  %v381_v53 = vmul.f32 %v377_v49, %v373_v46 }
 0x104   : > { %v382_v54 = vadd.f32 %v379_v51, %v358_v47  ;;  %v383_v55 = vadd.f32 %v380_v52, %v359_v48  ;;  %v384_v56 = vadd.f32 %v381_v53, %v360_v50 }
 0x106   : > { %v385_v57 = vmax.f32 %v382_v54, 0.0  ;;  %v386_v58 = vmax.f32 %v383_v55, 0.0  ;;  %v387_v59 = vmax.f32 %v384_v56, 0.0 }
 0x108   : > { %388 = vst [vmem:[%s301_s22] sm:$0xff] %v385_v57 }
 0x109   : > { %389 = vst [vmem:[%s301_s22 + $0x8] sm:$0xff] %v386_v58 }
 0x10a   : > { %391 = vst.msk [vmem:[%s301_s22 + $0x10] sm:$0xff] %vm390_vm6, %v387_v59 }
 0x10b PF: > { %s14_s19 = sadd.s32 1, %s634_s19   ;;  %s741_s15 = smov %s626_s17 }
 0x10c   : > { %p11_p7 = scmp.ge.s32.totalorder %s14_s19, 34   ;;  %s742_s16 = smov %s630_s18 }
 0x10d   : > { %s743_s17 = smov %s746_s20  ;;  %s744_s18 = smov %s750_s21 }
 0x10e   :  { %13 = sbr.rel (!%p11_p7) target bundleno = 3 (0x3), region = 75 }

</bundles_post_ra>
